<compile_context>
chip_gen: v7x
topology: tpu7x:2x2x1
jax: 0.10.0
libtpu: 0.0.40
codegen_flags: <defaults>
</compile_context>

<pallas_src>
import functools

import jax
import jax.numpy as jnp
import numpy as np
from jax.experimental import pallas as pl
from jax.experimental.pallas import tpu as pltpu


def _round_up(x, m):
    return ((x + m - 1) // m) * m


def policy_head_kernel(x_ref, wcs_ref, bias_ref, wd_ref, bd_ref, out_ref, *,
                       num_filters, num_channels):
    # x_ref: (C, TB, HW) channel-major; each x_ref[c] is a contiguous (TB, HW) slab.
    xc = [x_ref[c] for c in range(num_channels)]

    # 1x1 conv (+ folded BN scale into weight, folded bias) + ReLU.
    # Channel contraction (K = C, tiny) done as scalar*vector FMAs on the VPU.
    pieces = []
    for f in range(num_filters):
        acc = xc[0] * wcs_ref[f, 0]
        for c in range(1, num_channels):
            acc = acc + xc[c] * wcs_ref[f, c]
        pieces.append(jnp.maximum(acc + bias_ref[f], 0.0))

    # Flatten in PyTorch NCHW order (filter-major): lane index = f*HW + p.
    act = jnp.concatenate(pieces, axis=-1)                    # (TB, F*HW)

    # Dense layer as a single lane-dense MXU matmul.
    logits = jnp.dot(act, wd_ref[...], preferred_element_type=jnp.float32)
    logits = logits + bd_ref[...]                             # padded lanes hold -1e30

    # log_softmax over the (padded) logit lanes; padded lanes contribute exp() = 0.
    m = jnp.max(logits, axis=-1, keepdims=True)
    z = logits - m
    lse = jnp.log(jnp.sum(jnp.exp(z), axis=-1, keepdims=True))
    out_ref[...] = (z - lse).astype(out_ref.dtype)


def policy_head_forward(x_nchw, params, bn_eps=1e-5):
    B, C, H, W = x_nchw.shape
    HW = H * W

    conv_w = params["conv_w"]                                 # (F, C, 1, 1)
    F_ = conv_w.shape[0]
    wc = conv_w.reshape(F_, C).astype(jnp.float32)

    # Fold eval-mode BatchNorm (+ conv bias) into conv weight / per-filter bias.
    scale = params["bn_gamma"] / jnp.sqrt(params["bn_var"] + bn_eps)      # (F,)
    wcs = (wc * scale[:, None]).astype(jnp.float32)                       # (F, C)
    bias = ((params["conv_b"] - params["bn_mean"]) * scale
            + params["bn_beta"]).astype(jnp.float32)                      # (F,)

    dense_w = params["dense_w"]                               # (O, F*HW), PyTorch layout
    O = dense_w.shape[0]
    O_pad = _round_up(O, 128)
    wd = dense_w.reshape(O, F_ * HW).T.astype(jnp.float32)    # (F*HW, O), f-major rows
    wd = jnp.pad(wd, ((0, 0), (0, O_pad - O)))                # zero weights in pad lanes
    # Padded bias lanes = -1e30 -> padded logits ~ -1e30 -> exp underflows to 0,
    # so the in-kernel log_softmax needs no explicit mask.
    bd = jnp.pad(params["dense_b"].astype(jnp.float32), (0, O_pad - O),
                 constant_values=-1e30).reshape(1, O_pad)

    # Batch tile: multiple of 8 (f32 sublane), capped at 128; prefer >=2 grid steps
    # when the batch allows (v7x shards "parallel" grid steps across its 2 TCs).
    B8 = _round_up(B, 8)
    TB = min(128, B8)
    if TB == B8 and B8 >= 16:
        TB = _round_up(B8 // 2, 8)
    B_pad = _round_up(B, TB)

    # Channel-major input: (C, B_pad, HW); zero-pad the batch (padded rows sliced off).
    x = jnp.transpose(x_nchw.reshape(B, C, HW).astype(jnp.float32), (1, 0, 2))
    if B_pad != B:
        x = jnp.pad(x, ((0, 0), (0, B_pad - B), (0, 0)))

    kernel = functools.partial(policy_head_kernel, num_filters=F_, num_channels=C)

    out = pl.pallas_call(
        kernel,
        out_shape=jax.ShapeDtypeStruct((B_pad, O_pad), jnp.float32),
        grid_spec=pltpu.PrefetchScalarGridSpec(
            num_scalar_prefetch=0,
            grid=(B_pad // TB,),
            in_specs=[
                pl.BlockSpec((C, TB, HW), lambda b: (0, b, 0)),
                pl.BlockSpec(memory_space=pltpu.MemorySpace.SMEM),   # wcs (F, C)
                pl.BlockSpec(memory_space=pltpu.MemorySpace.SMEM),   # bias (F,)
                pl.BlockSpec((F_ * HW, O_pad), lambda b: (0, 0)),    # dense W (resident)
                pl.BlockSpec((1, O_pad), lambda b: (0, 0)),          # dense b (resident)
            ],
            out_specs=pl.BlockSpec((TB, O_pad), lambda b: (b, 0)),
        ),
        compiler_params=pltpu.CompilerParams(
            dimension_semantics=("parallel",)),
    )(x, wcs, bias, wd, bd)

    return out[:B, :O]


def policy_head_reference(x_nchw, params, bn_eps=1e-5):
    """Pure-JAX reference mirroring the PyTorch forward (eval-mode BN)."""
    B, C, H, W = x_nchw.shape
    F_ = params["conv_w"].shape[0]
    wc = params["conv_w"].reshape(F_, C)
    y = jnp.einsum("bchw,fc->bfhw", x_nchw, wc) + params["conv_b"][None, :, None, None]
    scale = params["bn_gamma"] / jnp.sqrt(params["bn_var"] + bn_eps)
    y = (y - params["bn_mean"][None, :, None, None]) * scale[None, :, None, None] \
        + params["bn_beta"][None, :, None, None]
    y = jnp.maximum(y, 0.0)
    flat = y.reshape(B, -1)                                   # PyTorch NCHW flatten
    logits = flat @ params["dense_w"].T + params["dense_b"]
    return jax.nn.log_softmax(logits, axis=-1)


if __name__ == "__main__":
    # Small shapes: input_dim = (C=4, H=16, W=16), filters=8, output_dim=10, batch=2
    B, C, H, W = 2, 4, 16, 16
    FILTERS, OUT_DIM = 8, 10

    key = jax.random.PRNGKey(0)
    ks = jax.random.split(key, 8)

    x = jax.random.normal(ks[0], (B, C, H, W), dtype=jnp.float32)

    params = {
        "conv_w": 0.1 * jax.random.normal(ks[1], (FILTERS, C, 1, 1), jnp.float32),
        "conv_b": 0.1 * jax.random.normal(ks[2], (FILTERS,), jnp.float32),
        "bn_gamma": 1.0 + 0.1 * jax.random.normal(ks[3], (FILTERS,), jnp.float32),
        "bn_beta": 0.1 * jax.random.normal(ks[4], (FILTERS,), jnp.float32),
        "bn_mean": 0.05 * jax.random.normal(ks[5], (FILTERS,), jnp.float32),
        "bn_var": jnp.abs(1.0 + 0.1 * jax.random.normal(ks[6], (FILTERS,), jnp.float32)),
        "dense_w": 0.05 * jax.random.normal(ks[7], (OUT_DIM, FILTERS * H * W), jnp.float32),
        "dense_b": jnp.linspace(-0.1, 0.1, OUT_DIM, dtype=jnp.float32),
    }

    out = policy_head_forward(x, params)
    out = jax.block_until_ready(out)

    ref = policy_head_reference(x, params)
    np.testing.assert_allclose(np.asarray(out), np.asarray(ref), rtol=1e-4, atol=1e-4)

    print("KERNEL_OK")
</pallas_src>

<mosaic_0001>
module attributes {stable_mosaic.version = 11 : i64} {
  func.func @policy_head_kernel(%arg0: i32, %arg1: memref<4x8x256xf32, #tpu.memory_space<vmem>>, %arg2: memref<8x4xf32, #tpu.memory_space<smem>>, %arg3: memref<8xf32, #tpu.memory_space<smem>>, %arg4: memref<2048x128xf32, #tpu.memory_space<vmem>>, %arg5: memref<1x128xf32, #tpu.memory_space<vmem>>, %arg6: memref<8x128xf32, #tpu.memory_space<vmem>>) attributes {dimension_semantics = [#tpu.dimension_semantics<parallel>], iteration_bounds = array<i64: 1>, scalar_prefetch = 0 : i64, scratch_operands = 0 : i64, tpu.core_type = #tpu.core_type<tc>, window_params = [{transform_indices = @transform_0, window_bounds = array<i64: 4, 8, 256>}, {transform_indices = @transform_1, window_bounds = array<i64: 8, 4>}, {transform_indices = @transform_2, window_bounds = array<i64: 8>}, {pipeline_mode = #tpu.pipeline_mode<synchronous>, transform_indices = @transform_3, window_bounds = array<i64: 2048, 128>}, {pipeline_mode = #tpu.pipeline_mode<synchronous>, transform_indices = @transform_4, window_bounds = array<i64: 1, 128>}, {transform_indices = @transform_5, window_bounds = array<i64: 8, 128>}]} {
    %c0 = arith.constant 0 : index
    %c0_0 = arith.constant 0 : index
    %c0_1 = arith.constant 0 : index
    %0 = vector.load %arg1[%c0, %c0_0, %c0_1] : memref<4x8x256xf32, #tpu.memory_space<vmem>>, vector<1x8x256xf32>
    %1 = vector.shape_cast %0 : vector<1x8x256xf32> to vector<8x256xf32>
    %c1 = arith.constant 1 : index
    %c0_2 = arith.constant 0 : index
    %c0_3 = arith.constant 0 : index
    %2 = vector.load %arg1[%c1, %c0_2, %c0_3] : memref<4x8x256xf32, #tpu.memory_space<vmem>>, vector<1x8x256xf32>
    %3 = vector.shape_cast %2 : vector<1x8x256xf32> to vector<8x256xf32>
    %c2 = arith.constant 2 : index
    %c0_4 = arith.constant 0 : index
    %c0_5 = arith.constant 0 : index
    %4 = vector.load %arg1[%c2, %c0_4, %c0_5] : memref<4x8x256xf32, #tpu.memory_space<vmem>>, vector<1x8x256xf32>
    %5 = vector.shape_cast %4 : vector<1x8x256xf32> to vector<8x256xf32>
    %c3 = arith.constant 3 : index
    %c0_6 = arith.constant 0 : index
    %c0_7 = arith.constant 0 : index
    %6 = vector.load %arg1[%c3, %c0_6, %c0_7] : memref<4x8x256xf32, #tpu.memory_space<vmem>>, vector<1x8x256xf32>
    %7 = vector.shape_cast %6 : vector<1x8x256xf32> to vector<8x256xf32>
    %c0_8 = arith.constant 0 : index
    %c0_9 = arith.constant 0 : index
    %8 = memref.load %arg2[%c0_8, %c0_9] : memref<8x4xf32, #tpu.memory_space<smem>>
    %9 = vector.broadcast %8 : f32 to vector<8x256xf32>
    %10 = arith.mulf %1, %9 : vector<8x256xf32>
    %c0_10 = arith.constant 0 : index
    %c1_11 = arith.constant 1 : index
    %11 = memref.load %arg2[%c0_10, %c1_11] : memref<8x4xf32, #tpu.memory_space<smem>>
    %12 = vector.broadcast %11 : f32 to vector<8x256xf32>
    %13 = arith.mulf %3, %12 : vector<8x256xf32>
    %14 = arith.addf %10, %13 : vector<8x256xf32>
    %c0_12 = arith.constant 0 : index
    %c2_13 = arith.constant 2 : index
    %15 = memref.load %arg2[%c0_12, %c2_13] : memref<8x4xf32, #tpu.memory_space<smem>>
    %16 = vector.broadcast %15 : f32 to vector<8x256xf32>
    %17 = arith.mulf %5, %16 : vector<8x256xf32>
    %18 = arith.addf %14, %17 : vector<8x256xf32>
    %c0_14 = arith.constant 0 : index
    %c3_15 = arith.constant 3 : index
    %19 = memref.load %arg2[%c0_14, %c3_15] : memref<8x4xf32, #tpu.memory_space<smem>>
    %20 = vector.broadcast %19 : f32 to vector<8x256xf32>
    %21 = arith.mulf %7, %20 : vector<8x256xf32>
    %22 = arith.addf %18, %21 : vector<8x256xf32>
    %c0_16 = arith.constant 0 : index
    %23 = memref.load %arg3[%c0_16] : memref<8xf32, #tpu.memory_space<smem>>
    %24 = vector.broadcast %23 : f32 to vector<8x256xf32>
    %25 = arith.addf %22, %24 : vector<8x256xf32>
    %cst = arith.constant 0.000000e+00 : f32
    %26 = vector.broadcast %cst : f32 to vector<8x256xf32>
    %27 = arith.maximumf %25, %26 : vector<8x256xf32>
    %c1_17 = arith.constant 1 : index
    %c0_18 = arith.constant 0 : index
    %28 = memref.load %arg2[%c1_17, %c0_18] : memref<8x4xf32, #tpu.memory_space<smem>>
    %29 = vector.broadcast %28 : f32 to vector<8x256xf32>
    %30 = arith.mulf %1, %29 : vector<8x256xf32>
    %c1_19 = arith.constant 1 : index
    %c1_20 = arith.constant 1 : index
    %31 = memref.load %arg2[%c1_19, %c1_20] : memref<8x4xf32, #tpu.memory_space<smem>>
    %32 = vector.broadcast %31 : f32 to vector<8x256xf32>
    %33 = arith.mulf %3, %32 : vector<8x256xf32>
    %34 = arith.addf %30, %33 : vector<8x256xf32>
    %c1_21 = arith.constant 1 : index
    %c2_22 = arith.constant 2 : index
    %35 = memref.load %arg2[%c1_21, %c2_22] : memref<8x4xf32, #tpu.memory_space<smem>>
    %36 = vector.broadcast %35 : f32 to vector<8x256xf32>
    %37 = arith.mulf %5, %36 : vector<8x256xf32>
    %38 = arith.addf %34, %37 : vector<8x256xf32>
    %c1_23 = arith.constant 1 : index
    %c3_24 = arith.constant 3 : index
    %39 = memref.load %arg2[%c1_23, %c3_24] : memref<8x4xf32, #tpu.memory_space<smem>>
    %40 = vector.broadcast %39 : f32 to vector<8x256xf32>
    %41 = arith.mulf %7, %40 : vector<8x256xf32>
    %42 = arith.addf %38, %41 : vector<8x256xf32>
    %c1_25 = arith.constant 1 : index
    %43 = memref.load %arg3[%c1_25] : memref<8xf32, #tpu.memory_space<smem>>
    %44 = vector.broadcast %43 : f32 to vector<8x256xf32>
    %45 = arith.addf %42, %44 : vector<8x256xf32>
    %cst_26 = arith.constant 0.000000e+00 : f32
    %46 = vector.broadcast %cst_26 : f32 to vector<8x256xf32>
    %47 = arith.maximumf %45, %46 : vector<8x256xf32>
    %c2_27 = arith.constant 2 : index
    %c0_28 = arith.constant 0 : index
    %48 = memref.load %arg2[%c2_27, %c0_28] : memref<8x4xf32, #tpu.memory_space<smem>>
    %49 = vector.broadcast %48 : f32 to vector<8x256xf32>
    %50 = arith.mulf %1, %49 : vector<8x256xf32>
    %c2_29 = arith.constant 2 : index
    %c1_30 = arith.constant 1 : index
    %51 = memref.load %arg2[%c2_29, %c1_30] : memref<8x4xf32, #tpu.memory_space<smem>>
    %52 = vector.broadcast %51 : f32 to vector<8x256xf32>
    %53 = arith.mulf %3, %52 : vector<8x256xf32>
    %54 = arith.addf %50, %53 : vector<8x256xf32>
    %c2_31 = arith.constant 2 : index
    %c2_32 = arith.constant 2 : index
    %55 = memref.load %arg2[%c2_31, %c2_32] : memref<8x4xf32, #tpu.memory_space<smem>>
    %56 = vector.broadcast %55 : f32 to vector<8x256xf32>
    %57 = arith.mulf %5, %56 : vector<8x256xf32>
    %58 = arith.addf %54, %57 : vector<8x256xf32>
    %c2_33 = arith.constant 2 : index
    %c3_34 = arith.constant 3 : index
    %59 = memref.load %arg2[%c2_33, %c3_34] : memref<8x4xf32, #tpu.memory_space<smem>>
    %60 = vector.broadcast %59 : f32 to vector<8x256xf32>
    %61 = arith.mulf %7, %60 : vector<8x256xf32>
    %62 = arith.addf %58, %61 : vector<8x256xf32>
    %c2_35 = arith.constant 2 : index
    %63 = memref.load %arg3[%c2_35] : memref<8xf32, #tpu.memory_space<smem>>
    %64 = vector.broadcast %63 : f32 to vector<8x256xf32>
    %65 = arith.addf %62, %64 : vector<8x256xf32>
    %cst_36 = arith.constant 0.000000e+00 : f32
    %66 = vector.broadcast %cst_36 : f32 to vector<8x256xf32>
    %67 = arith.maximumf %65, %66 : vector<8x256xf32>
    %c3_37 = arith.constant 3 : index
    %c0_38 = arith.constant 0 : index
    %68 = memref.load %arg2[%c3_37, %c0_38] : memref<8x4xf32, #tpu.memory_space<smem>>
    %69 = vector.broadcast %68 : f32 to vector<8x256xf32>
    %70 = arith.mulf %1, %69 : vector<8x256xf32>
    %c3_39 = arith.constant 3 : index
    %c1_40 = arith.constant 1 : index
    %71 = memref.load %arg2[%c3_39, %c1_40] : memref<8x4xf32, #tpu.memory_space<smem>>
    %72 = vector.broadcast %71 : f32 to vector<8x256xf32>
    %73 = arith.mulf %3, %72 : vector<8x256xf32>
    %74 = arith.addf %70, %73 : vector<8x256xf32>
    %c3_41 = arith.constant 3 : index
    %c2_42 = arith.constant 2 : index
    %75 = memref.load %arg2[%c3_41, %c2_42] : memref<8x4xf32, #tpu.memory_space<smem>>
    %76 = vector.broadcast %75 : f32 to vector<8x256xf32>
    %77 = arith.mulf %5, %76 : vector<8x256xf32>
    %78 = arith.addf %74, %77 : vector<8x256xf32>
    %c3_43 = arith.constant 3 : index
    %c3_44 = arith.constant 3 : index
    %79 = memref.load %arg2[%c3_43, %c3_44] : memref<8x4xf32, #tpu.memory_space<smem>>
    %80 = vector.broadcast %79 : f32 to vector<8x256xf32>
    %81 = arith.mulf %7, %80 : vector<8x256xf32>
    %82 = arith.addf %78, %81 : vector<8x256xf32>
    %c3_45 = arith.constant 3 : index
    %83 = memref.load %arg3[%c3_45] : memref<8xf32, #tpu.memory_space<smem>>
    %84 = vector.broadcast %83 : f32 to vector<8x256xf32>
    %85 = arith.addf %82, %84 : vector<8x256xf32>
    %cst_46 = arith.constant 0.000000e+00 : f32
    %86 = vector.broadcast %cst_46 : f32 to vector<8x256xf32>
    %87 = arith.maximumf %85, %86 : vector<8x256xf32>
    %c4 = arith.constant 4 : index
    %c0_47 = arith.constant 0 : index
    %88 = memref.load %arg2[%c4, %c0_47] : memref<8x4xf32, #tpu.memory_space<smem>>
    %89 = vector.broadcast %88 : f32 to vector<8x256xf32>
    %90 = arith.mulf %1, %89 : vector<8x256xf32>
    %c4_48 = arith.constant 4 : index
    %c1_49 = arith.constant 1 : index
    %91 = memref.load %arg2[%c4_48, %c1_49] : memref<8x4xf32, #tpu.memory_space<smem>>
    %92 = vector.broadcast %91 : f32 to vector<8x256xf32>
    %93 = arith.mulf %3, %92 : vector<8x256xf32>
    %94 = arith.addf %90, %93 : vector<8x256xf32>
    %c4_50 = arith.constant 4 : index
    %c2_51 = arith.constant 2 : index
    %95 = memref.load %arg2[%c4_50, %c2_51] : memref<8x4xf32, #tpu.memory_space<smem>>
    %96 = vector.broadcast %95 : f32 to vector<8x256xf32>
    %97 = arith.mulf %5, %96 : vector<8x256xf32>
    %98 = arith.addf %94, %97 : vector<8x256xf32>
    %c4_52 = arith.constant 4 : index
    %c3_53 = arith.constant 3 : index
    %99 = memref.load %arg2[%c4_52, %c3_53] : memref<8x4xf32, #tpu.memory_space<smem>>
    %100 = vector.broadcast %99 : f32 to vector<8x256xf32>
    %101 = arith.mulf %7, %100 : vector<8x256xf32>
    %102 = arith.addf %98, %101 : vector<8x256xf32>
    %c4_54 = arith.constant 4 : index
    %103 = memref.load %arg3[%c4_54] : memref<8xf32, #tpu.memory_space<smem>>
    %104 = vector.broadcast %103 : f32 to vector<8x256xf32>
    %105 = arith.addf %102, %104 : vector<8x256xf32>
    %cst_55 = arith.constant 0.000000e+00 : f32
    %106 = vector.broadcast %cst_55 : f32 to vector<8x256xf32>
    %107 = arith.maximumf %105, %106 : vector<8x256xf32>
    %c5 = arith.constant 5 : index
    %c0_56 = arith.constant 0 : index
    %108 = memref.load %arg2[%c5, %c0_56] : memref<8x4xf32, #tpu.memory_space<smem>>
    %109 = vector.broadcast %108 : f32 to vector<8x256xf32>
    %110 = arith.mulf %1, %109 : vector<8x256xf32>
    %c5_57 = arith.constant 5 : index
    %c1_58 = arith.constant 1 : index
    %111 = memref.load %arg2[%c5_57, %c1_58] : memref<8x4xf32, #tpu.memory_space<smem>>
    %112 = vector.broadcast %111 : f32 to vector<8x256xf32>
    %113 = arith.mulf %3, %112 : vector<8x256xf32>
    %114 = arith.addf %110, %113 : vector<8x256xf32>
    %c5_59 = arith.constant 5 : index
    %c2_60 = arith.constant 2 : index
    %115 = memref.load %arg2[%c5_59, %c2_60] : memref<8x4xf32, #tpu.memory_space<smem>>
    %116 = vector.broadcast %115 : f32 to vector<8x256xf32>
    %117 = arith.mulf %5, %116 : vector<8x256xf32>
    %118 = arith.addf %114, %117 : vector<8x256xf32>
    %c5_61 = arith.constant 5 : index
    %c3_62 = arith.constant 3 : index
    %119 = memref.load %arg2[%c5_61, %c3_62] : memref<8x4xf32, #tpu.memory_space<smem>>
    %120 = vector.broadcast %119 : f32 to vector<8x256xf32>
    %121 = arith.mulf %7, %120 : vector<8x256xf32>
    %122 = arith.addf %118, %121 : vector<8x256xf32>
    %c5_63 = arith.constant 5 : index
    %123 = memref.load %arg3[%c5_63] : memref<8xf32, #tpu.memory_space<smem>>
    %124 = vector.broadcast %123 : f32 to vector<8x256xf32>
    %125 = arith.addf %122, %124 : vector<8x256xf32>
    %cst_64 = arith.constant 0.000000e+00 : f32
    %126 = vector.broadcast %cst_64 : f32 to vector<8x256xf32>
    %127 = arith.maximumf %125, %126 : vector<8x256xf32>
    %c6 = arith.constant 6 : index
    %c0_65 = arith.constant 0 : index
    %128 = memref.load %arg2[%c6, %c0_65] : memref<8x4xf32, #tpu.memory_space<smem>>
    %129 = vector.broadcast %128 : f32 to vector<8x256xf32>
    %130 = arith.mulf %1, %129 : vector<8x256xf32>
    %c6_66 = arith.constant 6 : index
    %c1_67 = arith.constant 1 : index
    %131 = memref.load %arg2[%c6_66, %c1_67] : memref<8x4xf32, #tpu.memory_space<smem>>
    %132 = vector.broadcast %131 : f32 to vector<8x256xf32>
    %133 = arith.mulf %3, %132 : vector<8x256xf32>
    %134 = arith.addf %130, %133 : vector<8x256xf32>
    %c6_68 = arith.constant 6 : index
    %c2_69 = arith.constant 2 : index
    %135 = memref.load %arg2[%c6_68, %c2_69] : memref<8x4xf32, #tpu.memory_space<smem>>
    %136 = vector.broadcast %135 : f32 to vector<8x256xf32>
    %137 = arith.mulf %5, %136 : vector<8x256xf32>
    %138 = arith.addf %134, %137 : vector<8x256xf32>
    %c6_70 = arith.constant 6 : index
    %c3_71 = arith.constant 3 : index
    %139 = memref.load %arg2[%c6_70, %c3_71] : memref<8x4xf32, #tpu.memory_space<smem>>
    %140 = vector.broadcast %139 : f32 to vector<8x256xf32>
    %141 = arith.mulf %7, %140 : vector<8x256xf32>
    %142 = arith.addf %138, %141 : vector<8x256xf32>
    %c6_72 = arith.constant 6 : index
    %143 = memref.load %arg3[%c6_72] : memref<8xf32, #tpu.memory_space<smem>>
    %144 = vector.broadcast %143 : f32 to vector<8x256xf32>
    %145 = arith.addf %142, %144 : vector<8x256xf32>
    %cst_73 = arith.constant 0.000000e+00 : f32
    %146 = vector.broadcast %cst_73 : f32 to vector<8x256xf32>
    %147 = arith.maximumf %145, %146 : vector<8x256xf32>
    %c7 = arith.constant 7 : index
    %c0_74 = arith.constant 0 : index
    %148 = memref.load %arg2[%c7, %c0_74] : memref<8x4xf32, #tpu.memory_space<smem>>
    %149 = vector.broadcast %148 : f32 to vector<8x256xf32>
    %150 = arith.mulf %1, %149 : vector<8x256xf32>
    %c7_75 = arith.constant 7 : index
    %c1_76 = arith.constant 1 : index
    %151 = memref.load %arg2[%c7_75, %c1_76] : memref<8x4xf32, #tpu.memory_space<smem>>
    %152 = vector.broadcast %151 : f32 to vector<8x256xf32>
    %153 = arith.mulf %3, %152 : vector<8x256xf32>
    %154 = arith.addf %150, %153 : vector<8x256xf32>
    %c7_77 = arith.constant 7 : index
    %c2_78 = arith.constant 2 : index
    %155 = memref.load %arg2[%c7_77, %c2_78] : memref<8x4xf32, #tpu.memory_space<smem>>
    %156 = vector.broadcast %155 : f32 to vector<8x256xf32>
    %157 = arith.mulf %5, %156 : vector<8x256xf32>
    %158 = arith.addf %154, %157 : vector<8x256xf32>
    %c7_79 = arith.constant 7 : index
    %c3_80 = arith.constant 3 : index
    %159 = memref.load %arg2[%c7_79, %c3_80] : memref<8x4xf32, #tpu.memory_space<smem>>
    %160 = vector.broadcast %159 : f32 to vector<8x256xf32>
    %161 = arith.mulf %7, %160 : vector<8x256xf32>
    %162 = arith.addf %158, %161 : vector<8x256xf32>
    %c7_81 = arith.constant 7 : index
    %163 = memref.load %arg3[%c7_81] : memref<8xf32, #tpu.memory_space<smem>>
    %164 = vector.broadcast %163 : f32 to vector<8x256xf32>
    %165 = arith.addf %162, %164 : vector<8x256xf32>
    %cst_82 = arith.constant 0.000000e+00 : f32
    %166 = vector.broadcast %cst_82 : f32 to vector<8x256xf32>
    %167 = arith.maximumf %165, %166 : vector<8x256xf32>
    %168 = tpu.concatenate %27, %47, %67, %87, %107, %127, %147, %167 in 1 : vector<8x256xf32>, vector<8x256xf32>, vector<8x256xf32>, vector<8x256xf32>, vector<8x256xf32>, vector<8x256xf32>, vector<8x256xf32>, vector<8x256xf32> -> vector<8x2048xf32>
    %c0_83 = arith.constant 0 : index
    %c0_84 = arith.constant 0 : index
    %169 = vector.load %arg4[%c0_83, %c0_84] : memref<2048x128xf32, #tpu.memory_space<vmem>>, vector<2048x128xf32>
    %cst_85 = arith.constant dense<0.000000e+00> : vector<8x128xf32>
    %170 = tpu.matmul %168, %169, %cst_85 {dimension_numbers = #tpu.dot_dimension_numbers<[1], [0], [0], [1], [0, 0, 1, 1], [], []>} : vector<8x2048xf32>, vector<2048x128xf32>, vector<8x128xf32> -> vector<8x128xf32>
    %c0_86 = arith.constant 0 : index
    %c0_87 = arith.constant 0 : index
    %171 = vector.load %arg5[%c0_86, %c0_87] : memref<1x128xf32, #tpu.memory_space<vmem>>, vector<1x128xf32>
    %172 = vector.broadcast %171 : vector<1x128xf32> to vector<8x128xf32>
    %173 = arith.addf %170, %172 : vector<8x128xf32>
    %cst_88 = arith.constant dense<0xFF800000> : vector<8xf32>
    %174 = vector.multi_reduction <maximumf>, %173, %cst_88 [1] : vector<8x128xf32> to vector<8xf32>
    %175 = vector.shape_cast %174 : vector<8xf32> to vector<8x1xf32>
    %176 = vector.broadcast %175 : vector<8x1xf32> to vector<8x128xf32>
    %177 = arith.subf %173, %176 : vector<8x128xf32>
    %178 = math.exp %177 : vector<8x128xf32>
    %cst_89 = arith.constant dense<0.000000e+00> : vector<8xf32>
    %179 = vector.multi_reduction <add>, %178, %cst_89 [1] : vector<8x128xf32> to vector<8xf32>
    %180 = vector.shape_cast %179 : vector<8xf32> to vector<8x1xf32>
    %181 = math.log %180 : vector<8x1xf32>
    %182 = vector.broadcast %181 : vector<8x1xf32> to vector<8x128xf32>
    %183 = arith.subf %177, %182 : vector<8x128xf32>
    %c0_90 = arith.constant 0 : index
    %c0_91 = arith.constant 0 : index
    %184 = vector.load %arg6[%c0_90, %c0_91] : memref<8x128xf32, #tpu.memory_space<vmem>>, vector<8x128xf32>
    tpu.vector_store %arg6[%c0_90, %c0_91], %183 {strides = array<i32>} : memref<8x128xf32, #tpu.memory_space<vmem>>, vector<8x128xf32>,
    return
  }
  func.func @transform_0(%arg0: i32) -> (i32, i32, i32) {
    %c0_i32 = arith.constant 0 : i32
    %c0_i32_0 = arith.constant 0 : i32
    %c0_i32_1 = arith.constant 0 : i32
    return %c0_i32, %arg0, %c0_i32_0 : i32, i32, i32
  }
  func.func @transform_1(%arg0: i32) -> (i32, i32) {
    %c0_i32 = arith.constant 0 : i32
    %c0_i32_0 = arith.constant 0 : i32
    %c0_i32_1 = arith.constant 0 : i32
    return %c0_i32, %c0_i32_0 : i32, i32
  }
  func.func @transform_2(%arg0: i32) -> i32 {
    %c0_i32 = arith.constant 0 : i32
    %c0_i32_0 = arith.constant 0 : i32
    return %c0_i32 : i32
  }
  func.func @transform_3(%arg0: i32) -> (i32, i32) {
    %c0_i32 = arith.constant 0 : i32
    %c0_i32_0 = arith.constant 0 : i32
    %c0_i32_1 = arith.constant 0 : i32
    return %c0_i32, %c0_i32_0 : i32, i32
  }
  func.func @transform_4(%arg0: i32) -> (i32, i32) {
    %c0_i32 = arith.constant 0 : i32
    %c0_i32_0 = arith.constant 0 : i32
    %c0_i32_1 = arith.constant 0 : i32
    return %c0_i32, %c0_i32_0 : i32, i32
  }
  func.func @transform_5(%arg0: i32) -> (i32, i32) {
    %c0_i32 = arith.constant 0 : i32
    %c0_i32_0 = arith.constant 0 : i32
    return %arg0, %c0_i32 : i32, i32
  }
}

</mosaic_0001>

<bundles_post_ra>
// kernel: tpu_custom_call.1
= control target key start
LH: loop header
LB: loop body
LE: loop exit
PB: predicated region body
PF: predicated region fallthrough
CT: control target
= control target key end

     0   :  { %10 = vsyncpa [#allocation3], 0  ;;  %s2249_s0 = inlined_call_operand.hbm [shape: f32[4,8,256], index: 0, kind: input, shape index: {}]   ;;  %s2250_s1 = inlined_call_operand.vmem [shape: f32[8,4], index: 1, kind: input, shape index: {}]   ;;  %s2251_s2 = inlined_call_operand.vmem [shape: f32[8], index: 2, kind: input, shape index: {}]   ;;  %s2252_s3 = inlined_call_operand.hbm [shape: f32[2048,128], index: 3, kind: input, shape index: {}]   ;;  %s2253_s4 = inlined_call_operand.vmem [shape: f32[1,128], index: 4, kind: input, shape index: {}]   ;;  %s2254_s5 = inlined_call_operand.hbm [shape: f32[8,128], index: 5, kind: output, shape index: {}]  }
   0x1   :  { %11 = vsyncpa [#allocation5], 0 }
   0x2   :  { %12 = vsyncpa [#allocation8], 0 }
   0x3   :  { %13 = vsyncpa [#allocation10], 0 }
   0x4   :  { %14 = vsyncpa [#allocation4], 0  ;;  %s1849_s18 = smov [#allocation2]   ;;  %s33_s22 = sshll.u32 %s2250_s1, 4  ;;  %s34_s22 = int_to_ptr.vmem [resolvable:$true] %s33_s22 }
   0x5   :  { %s20_s19 = sshll.u32 %s1849_s18, 4  ;;  %s1749_s25 = scalar_lea.hbm %s2249_s0, 1024  ;;  %s21_s19 = int_to_ptr.vmem [resolvable:$true] %s20_s19 }
   0x6   :  { %p1750_p0 = scmp.ne.s32.totalorder %s2249_s0, %s1749_s25  ;;  %p1753_p1 = scmp.lt.u32.totalorder %s1749_s25, %s2249_s0 }
   0x8   :  { %p1755_p2 = pnand %p1753_p1, %p1750_p0 }
   0xa   :  { %1758 = shalt.err (!%p1755_p2)
}
   0xb   :  { %s1759_s30 = scalar_lea.vmem %s21_s19, 1024  ;;  %p1764_p4 = scmp.lt.s32.totalorder %s21_s19, %s21_s19 }
   0xc   :  { %p1760_p3 = scmp.ne.s32.totalorder %s21_s19, %s1759_s30  ;;  %p1765_p5 = scmp.lt.s32.totalorder %s1759_s30, %s1759_s30 }
   0xe   :  { %p1766_p6 = por %p1765_p5, %p1764_p4 }
  0x10   :  { %p1767_p7 = pnand %p1766_p6, %p1760_p3 }
  0x12   :  { %1770 = shalt.err (!%p1767_p7)
}
  0x13   :  { %s1850_s1 = smov 256   ;;  %s1851_s6 = smov 16  }
  0x14   :  { %26 = dma.hbm_to_vmem [thread:$0]  %s2249_s0, 1024, %s21_s19, [#allocation3], %s1850_s1, %s1850_s1, %s1851_s6  }
  0x15   :  { %s1771_s9 = scalar_lea.vmem %s34_s22, 128  ;;  %p1776_p9 = scmp.lt.s32.totalorder %s34_s22, %s34_s22 }
  0x16   :  { %p1772_p8 = scmp.ne.s32.totalorder %s34_s22, %s1771_s9  ;;  %p1777_p10 = scmp.lt.s32.totalorder %s1771_s9, %s1771_s9 }
  0x18   :  { %p1778_p11 = por %p1777_p10, %p1776_p9 }
  0x1a   :  { %p1779_p12 = pnand %p1778_p11, %p1772_p8 }
  0x1c   :  { %1782 = shalt.err (!%p1779_p12)
}
  0x1d   :  { %s1852_s10 = smov [#allocation6]   ;;  %s43_s13 = sshll.u32 %s2251_s2, 4  ;;  %s44_s13 = int_to_ptr.vmem [resolvable:$true] %s43_s13 }
  0x1e   :  { %36 = dma.vmem_to_smem %s34_s22, 128, %s1852_s10, [#allocation5]  }
  0x1f   :  { %s1783_s14 = scalar_lea.vmem %s44_s13, 16  ;;  %p1788_p0 = scmp.lt.s32.totalorder %s44_s13, %s44_s13 }
  0x20   :  { %p1784_p13 = scmp.ne.s32.totalorder %s44_s13, %s1783_s14  ;;  %p1789_p1 = scmp.lt.s32.totalorder %s1783_s14, %s1783_s14 }
  0x22   :  { %p1790_p2 = por %p1789_p1, %p1788_p0 }
  0x24   :  { %p1791_p3 = pnand %p1790_p2, %p1784_p13 }
  0x26   :  { %1794 = shalt.err (!%p1791_p3)
}
  0x27   :  { %s1853_s0 = smov [#allocation7]   ;;  %s1854_s15 = smov [#allocation9]  }
  0x28   :  { %46 = dma.vmem_to_smem %s44_s13, 16, %s1853_s0, [#allocation8]  }
  0x29   :  { %s52_s16 = sshll.u32 %s1854_s15, 4  ;;  %s1795_s19 = scalar_lea.hbm %s2252_s3, 32768  ;;  %s53_s16 = int_to_ptr.vmem [resolvable:$true] %s52_s16 }
  0x2a   :  { %p1796_p4 = scmp.ne.s32.totalorder %s2252_s3, %s1795_s19  ;;  %p1799_p5 = scmp.lt.u32.totalorder %s1795_s19, %s2252_s3 }
  0x2c   :  { %p1801_p6 = pnand %p1799_p5, %p1796_p4 }
  0x2e   :  { %1804 = shalt.err (!%p1801_p6)
}
  0x2f   :  { %s1805_s23 = scalar_lea.vmem %s53_s16, 32768  ;;  %p1810_p8 = scmp.lt.s32.totalorder %s53_s16, %s53_s16 }
  0x30   :  { %p1806_p7 = scmp.ne.s32.totalorder %s53_s16, %s1805_s23  ;;  %p1811_p9 = scmp.lt.s32.totalorder %s1805_s23, %s1805_s23 }
  0x32   :  { %p1812_p10 = por %p1811_p9, %p1810_p8 }
  0x34   :  { %p1813_p11 = pnand %p1812_p10, %p1806_p7 }
  0x36   :  { %1816 = shalt.err (!%p1813_p11)
}
  0x37   :  { %s1855_s24 = smov 128   ;;  %s1856_s25 = smov 8  }
  0x38   :  { %58 = dma.hbm_to_vmem [thread:$0]  %s2252_s3, 32768, %s53_s16, [#allocation10], %s1855_s24, %s1855_s24, %s1856_s25  }
  0x39   :  { %1839 = dma.done.wait [#allocation3], 1024  }
  0x3a   :  { %1840 = vsyncadd [#allocation3], 4294966272 }
  0x3b   :  { %1841 = dma.done.wait [#allocation5], 128  }
  0x3c   :  { %1842 = vsyncadd [#allocation5], 4294967168 }
  0x3d   :  { %1843 = dma.done.wait [#allocation8], 16  }
  0x3e   :  { %1844 = vsyncadd [#allocation8], 4294967280 }
  0x3f   :  { %1845 = dma.done.wait [#allocation10], 32768  }
  0x40   :  { %1846 = vsyncadd [#allocation10], 4294934528 }
  0x41   :  { %73 = sfence }
  0x42   :  { %v325_v0 = vld [vmem:[#allocation9 + $0x80] sm:$0xff]  ;;  %v326_v1 = vld [vmem:[#allocation9 + $0x88] sm:$0xff]  ;;  %v327_v11 = vld [vmem:[#allocation9 + $0x90] sm:$0xff]  ;;  %s1918_s3 = sld [smem:[#allocation6]]  ;;  %s1920_s28 = sld [smem:[#allocation6 + $0x1]] }
  0x43   :  { %v309_v2 = vld [vmem:[#allocation9] sm:$0xff]  ;;  %v1480_v3 = vpack.c.bf16 %v326_v1, %v325_v0  ;;  %v310_v4 = vld [vmem:[#allocation9 + $0x8] sm:$0xff]  ;;  %v328_v13 = vld [vmem:[#allocation9 + $0x98] sm:$0xff]  ;;  %s1922_s29 = sld [smem:[#allocation6 + $0x2]]  ;;  %s1924_s30 = sld [smem:[#allocation6 + $0x3]] }
  0x44   :  { %v357_v5 = vld [vmem:[#allocation9 + $0x180] sm:$0xff]  ;;  %v358_v6 = vld [vmem:[#allocation9 + $0x188] sm:$0xff]  ;;  %v1482_v7 = vpack.c.bf16 %v310_v4, %v309_v2  ;;  %v311_v14 = vld [vmem:[#allocation9 + $0x10] sm:$0xff]  ;;  %v1484_v16 = vpack.c.bf16 %v328_v13, %v327_v11  ;;  %s1926_s1 = sld [smem:[#allocation6 + $0x80]]  ;;  %s1928_s6 = sld [smem:[#allocation6 + $0x81]] }
  0x45   :  { %v1512_v8 = vpack.c.bf16 %v358_v6, %v357_v5  ;;  %v341_v9 = vld [vmem:[#allocation9 + $0x100] sm:$0xff]  ;;  %v342_v10 = vld [vmem:[#allocation9 + $0x108] sm:$0xff]  ;;  %1481 = vmatprep.subr.bf16.mxu0 %v1480_v3  ;;  %v312_v15 = vld [vmem:[#allocation9 + $0x18] sm:$0xff]  ;;  %s1930_s7 = sld [smem:[#allocation6 + $0x82]]  ;;  %s1932_s8 = sld [smem:[#allocation6 + $0x83]] }
  0x46   :  { %v1514_v12 = vpack.c.bf16 %v342_v10, %v341_v9  ;;  %1483 = vmatpush3.bf16.msra.mxu0 %v1482_v7  ;;  %v1486_v17 = vpack.c.bf16 %v312_v15, %v311_v14  ;;  %v359_v18 = vld [vmem:[#allocation9 + $0x190] sm:$0xff]  ;;  %v360_v19 = vld [vmem:[#allocation9 + $0x198] sm:$0xff]  ;;  %v329_v23 = vld [vmem:[#allocation9 + $0xa0] sm:$0xff]  ;;  %s1944_s9 = sld [smem:[#allocation7]]  ;;  %s1977_s10 = sld [smem:[#allocation7 + $0x1]] }
  0x47   :  { %1513 = vmatprep.subr.bf16.mxu1 %v1512_v8  ;;  %v343_v20 = vld [vmem:[#allocation9 + $0x110] sm:$0xff]  ;;  %v1516_v21 = vpack.c.bf16 %v360_v19, %v359_v18  ;;  %v344_v22 = vld [vmem:[#allocation9 + $0x118] sm:$0xff]  ;;  %v330_v24 = vld [vmem:[#allocation9 + $0xa8] sm:$0xff]  ;;  %1485 = vmatprep.subr.bf16.mxu0 %v1484_v16  ;;  %s2005_s11 = sld [smem:[#allocation6 + $0x100]]  ;;  %s2012_s12 = sld [smem:[#allocation6 + $0x101]] }
  0x48   :  { %1515 = vmatpush3.bf16.msra.mxu1 %v1514_v12  ;;  %v1518_v25 = vpack.c.bf16 %v344_v22, %v343_v20  ;;  %v1488_v26 = vpack.c.bf16 %v330_v24, %v329_v23  ;;  %v313_v27 = vld [vmem:[#allocation9 + $0x20] sm:$0xff]  ;;  %v314_v28 = vld [vmem:[#allocation9 + $0x28] sm:$0xff]  ;;  %v331_v35 = vld [vmem:[#allocation9 + $0xb0] sm:$0xff]  ;;  %v86_v14 = vstv %s1918_s3  ;;  %v90_v15 = vstv %s1920_s28  ;;  %s2014_s13 = sld [smem:[#allocation6 + $0x102]]  ;;  %s2018_s14 = sld [smem:[#allocation6 + $0x103]] }
  0x49   :  { %v361_v29 = vld [vmem:[#allocation9 + $0x1a0] sm:$0xff]  ;;  %1517 = vmatprep.subr.bf16.mxu1 %v1516_v21  ;;  %v362_v30 = vld [vmem:[#allocation9 + $0x1a8] sm:$0xff]  ;;  %v1490_v33 = vpack.c.bf16 %v314_v28, %v313_v27  ;;  %v332_v36 = vld [vmem:[#allocation9 + $0xb8] sm:$0xff]  ;;  %v96_v18 = vstv %s1922_s29  ;;  %v102_v19 = vstv %s1924_s30  ;;  %s2021_s0 = sld [smem:[#allocation6 + $0x180]]  ;;  %s2024_s15 = sld [smem:[#allocation7 + $0x2]] }
  0x4a   :  { %v345_v31 = vld [vmem:[#allocation9 + $0x120] sm:$0xff]  ;;  %v346_v32 = vld [vmem:[#allocation9 + $0x128] sm:$0xff]  ;;  %1487 = vmatpush3.bf16.msra.mxu0 %v1486_v17  ;;  %v1520_v34 = vpack.c.bf16 %v362_v30, %v361_v29  ;;  %v315_v37 = vld [vmem:[#allocation9 + $0x30] sm:$0xff]  ;;  %v1492_v39 = vpack.c.bf16 %v332_v36, %v331_v35  ;;  %v114_v20 = vstv %s1926_s1  ;;  %v118_v21 = vstv %s1928_s6  ;;  %s2026_s16 = sld [smem:[#allocation6 + $0x181]]  ;;  %s2030_s17 = sld [smem:[#allocation6 + $0x182]] }
  0x4b   :  { %1489 = vmatprep.subr.bf16.mxu0 %v1488_v26  ;;  %v1522_v38 = vpack.c.bf16 %v346_v32, %v345_v31  ;;  %v316_v40 = vld [vmem:[#allocation9 + $0x38] sm:$0xff]  ;;  %v363_v41 = vld [vmem:[#allocation9 + $0x1b0] sm:$0xff]  ;;  %v333_v46 = vld [vmem:[#allocation9 + $0xc0] sm:$0xff]  ;;  %v124_v27 = vstv %s1930_s7  ;;  %s2036_s18 = sld [smem:[#allocation6 + $0x183]]  ;;  %s2049_s19 = sld [smem:[#allocation6 + $0x200]] }
  0x4c   :  { %1519 = vmatpush3.bf16.msra.mxu1 %v1518_v25  ;;  %v364_v42 = vld [vmem:[#allocation9 + $0x1b8] sm:$0xff]  ;;  %v347_v44 = vld [vmem:[#allocation9 + $0x130] sm:$0xff]  ;;  %v334_v47 = vld [vmem:[#allocation9 + $0xc8] sm:$0xff]  ;;  %v1494_v48 = vpack.c.bf16 %v316_v40, %v315_v37  ;;  %s2062_s20 = sld [smem:[#allocation7 + $0x3]]  ;;  %s2064_s21 = sld [smem:[#allocation6 + $0x201]] }
  0x4d   :  { %1521 = vmatprep.subr.bf16.mxu1 %v1520_v34  ;;  %v1524_v43 = vpack.c.bf16 %v364_v42, %v363_v41  ;;  %v348_v45 = vld [vmem:[#allocation9 + $0x138] sm:$0xff]  ;;  %v365_v49 = vld [vmem:[#allocation9 + $0x1c0] sm:$0xff]  ;;  %v366_v50 = vld [vmem:[#allocation9 + $0x1c8] sm:$0xff]  ;;  %v1496_v52 = vpack.c.bf16 %v334_v47, %v333_v46  ;;  %s2070_s2 = sld [smem:[#allocation6 + $0x202]]  ;;  %s2099_s22 = sld [smem:[#allocation6 + $0x203]] }
  0x4e   :  { %1491 = vmatpush3.bf16.msra.mxu0 %v1490_v33  ;;  %v1526_v51 = vpack.c.bf16 %v348_v45, %v347_v44  ;;  %v317_v53 = vld [vmem:[#allocation9 + $0x40] sm:$0xff]  ;;  %v318_v54 = vld [vmem:[#allocation9 + $0x48] sm:$0xff]  ;;  %v1528_v56 = vpack.c.bf16 %v366_v50, %v365_v49  ;;  %v335_v58 = vld [vmem:[#allocation9 + $0xd0] sm:$0xff]  ;;  %v130_v33 = vstv %s1932_s8  ;;  %s2109_s23 = sld [smem:[#allocation6 + $0x280]]  ;;  %s2118_s24 = sld [smem:[#allocation7 + $0x4]] }
  0x4f   :  { %1493 = vmatprep.subr.bf16.mxu0 %v1492_v39  ;;  %v349_v55 = vld [vmem:[#allocation9 + $0x140] sm:$0xff]  ;;  %v350_v57 = vld [vmem:[#allocation9 + $0x148] sm:$0xff]  ;;  %v336_v59 = vld [vmem:[#allocation9 + $0xd8] sm:$0xff]  ;;  %v1498_v1 = vpack.c.bf16 %v318_v54, %v317_v53  ;;  %s2120_s25 = sld [smem:[#allocation6 + $0x281]]  ;;  %s2126_s26 = sld [smem:[#allocation6 + $0x282]] }
  0x50   :  { %1523 = vmatpush3.bf16.msra.mxu1 %v1522_v38  ;;  %v319_v60 = vld [vmem:[#allocation9 + $0x50] sm:$0xff]  ;;  %v320_v61 = vld [vmem:[#allocation9 + $0x58] sm:$0xff]  ;;  %v1938_v3 = vld [vmem:[#allocation9 + $0xe0] sm:$0xff]  ;;  %v1530_v5 = vpack.c.bf16 %v350_v57, %v349_v55  ;;  %v1500_v6 = vpack.c.bf16 %v336_v59, %v335_v58  ;;  %v108_v59 = vstv %s1944_s9  ;;  %s2134_s27 = sld [smem:[#allocation6 + $0x283]]  ;;  %s2144_s3 = sld [smem:[#allocation7 + $0x5]] }
  0x51   :  { %1525 = vmatprep.subr.bf16.mxu1 %v1524_v43  ;;  %v367_v62 = vld [vmem:[#allocation9 + $0x1d0] sm:$0xff]  ;;  %v368_v63 = vld [vmem:[#allocation9 + $0x1d8] sm:$0xff]  ;;  %v338_v4 = vld [vmem:[#allocation9 + $0xe8] sm:$0xff]  ;;  %v1502_v22 = vpack.c.bf16 %v320_v61, %v319_v60  ;;  %s2146_s28 = sld [smem:[#allocation6 + $0x300]]  ;;  %s2151_s29 = sld [smem:[#allocation6 + $0x301]] }
  0x52   :  { %v1934_v0 = vld [vmem:[#allocation9 + $0x150] sm:$0xff]  ;;  %1495 = vmatpush3.bf16.msra.mxu0 %v1494_v48  ;;  %v1936_v2 = vld [vmem:[#allocation9 + $0x158] sm:$0xff]  ;;  %v1940_v7 = vld [vmem:[#allocation9 + $0x60] sm:$0xff]  ;;  %v1532_v10 = vpack.c.bf16 %v368_v63, %v367_v62  ;;  %v1504_v24 = vpack.c.bf16 %v338_v4, %v1938_v3  ;;  %s2157_s30 = sld [smem:[#allocation6 + $0x302]]  ;;  %s2164_s1 = sld [smem:[#allocation6 + $0x303]] }
  0x53   :  { %1497 = vmatprep.subr.bf16.mxu0 %v1496_v52  ;;  %v1942_v8 = vld [vmem:[#allocation9 + $0x68] sm:$0xff]  ;;  %v369_v9 = vld [vmem:[#allocation9 + $0x1e0] sm:$0xff]  ;;  %v1952_v16 = vld [vmem:[#allocation9 + $0xf0] sm:$0xff]  ;;  %v1534_v23 = vpack.c.bf16 %v1936_v2, %v1934_v0  ;;  %s2167_s6 = sld [smem:[#allocation6 + $0x380]]  ;;  %s2174_s7 = sld [smem:[#allocation6 + $0x381]] }
  0x54   :  { %1527 = vmatpush3.bf16.msra.mxu1 %v1526_v51  ;;  %v370_v11 = vld [vmem:[#allocation9 + $0x1e8] sm:$0xff]  ;;  %v1946_v12 = vld [vmem:[#allocation9 + $0x160] sm:$0xff]  ;;  %v1954_v17 = vld [vmem:[#allocation9 + $0xf8] sm:$0xff]  ;;  %v1506_v28 = vpack.c.bf16 %v1942_v8, %v1940_v7  ;;  %s2178_s8 = sld [smem:[#allocation6 + $0x382]]  ;;  %s2192_s9 = sld [smem:[#allocation6 + $0x383]] }
  0x55   :  { %1529 = vmatprep.subr.bf16.mxu1 %v1528_v56  ;;  %v1948_v13 = vld [vmem:[#allocation9 + $0x168] sm:$0xff]  ;;  %v1963_v25 = vld [vmem:[#allocation9 + $0x1f0] sm:$0xff]  ;;  %v1965_v26 = vld [vmem:[#allocation9 + $0x1f8] sm:$0xff]  ;;  %v1536_v29 = vpack.c.bf16 %v370_v11, %v369_v9  ;;  %v1508_v34 = vpack.c.bf16 %v1954_v17, %v1952_v16 }
  0x56   :  { %1499 = vmatpush3.bf16.msra.mxu0 %v1498_v1  ;;  %v1538_v30 = vpack.c.bf16 %v1948_v13, %v1946_v12  ;;  %v1972_v31 = vld [vmem:[#allocation2] sm:$0xff]  ;;  %v1974_v32 = vld [vmem:[#allocation2 + $0x8] sm:$0xff]  ;;  %v1981_v35 = vld [vmem:[#allocation2 + $0x10] sm:$0xff]  ;;  %v1540_v41 = vpack.c.bf16 %v1965_v26, %v1963_v25 }
  0x57   :  { %1501 = vmatprep.subr.bf16.mxu0 %v1500_v6  ;;  %v1983_v36 = vld [vmem:[#allocation2 + $0x18] sm:$0xff]  ;;  %v1985_v37 = vld [vmem:[#allocation2 + $0x20] sm:$0xff]  ;;  %v87_v38 = vmul.f32 %v86_v14, %v1972_v31  ;;  %v88_v39 = vmul.f32 %v86_v14, %v1974_v32  ;;  %v115_v40 = vmul.f32 %v114_v20, %v1972_v31  ;;  %v1992_v42 = vld [vmem:[#allocation2 + $0x28] sm:$0xff]  ;;  %v91_v45 = vmul.f32 %v90_v15, %v1981_v35 }
  0x58   :  { %1531 = vmatpush3.bf16.msra.mxu1 %v1530_v5  ;;  %v1994_v43 = vld [vmem:[#allocation2 + $0x30] sm:$0xff]  ;;  %v1996_v44 = vld [vmem:[#allocation2 + $0x38] sm:$0xff]  ;;  %v92_v46 = vmul.f32 %v90_v15, %v1983_v36  ;;  %v97_v47 = vmul.f32 %v96_v18, %v1985_v37  ;;  %v98_v50 = vmul.f32 %v96_v18, %v1992_v42  ;;  %v116_v52 = vmul.f32 %v114_v20, %v1974_v32  ;;  %v389_v60 = vld [vmem:[#allocation9 + $0x280] sm:$0xff] }
  0x59   :  { %1533 = vmatprep.subr.bf16.mxu1 %v1532_v10  ;;  %v323_v48 = vld [vmem:[#allocation9 + $0x70] sm:$0xff]  ;;  %v324_v49 = vld [vmem:[#allocation9 + $0x78] sm:$0xff]  ;;  %v103_v51 = vmul.f32 %v102_v19, %v1994_v43  ;;  %v119_v53 = vmul.f32 %v118_v21, %v1981_v35  ;;  %v93_v56 = vadd.f32 %v91_v45, %v87_v38  ;;  %v104_v58 = vmul.f32 %v102_v19, %v1996_v44  ;;  %v390_v61 = vld [vmem:[#allocation9 + $0x288] sm:$0xff] }
  0x5a   :  { %1503 = vmatpush3.bf16.msra.mxu0 %v1502_v22  ;;  %v355_v54 = vld [vmem:[#allocation9 + $0x170] sm:$0xff]  ;;  %v356_v55 = vld [vmem:[#allocation9 + $0x178] sm:$0xff]  ;;  %v94_v57 = vadd.f32 %v92_v46, %v88_v39  ;;  %v120_v62 = vmul.f32 %v118_v21, %v1983_v36  ;;  %v125_v0 = vmul.f32 %v124_v27, %v1985_v37  ;;  %v126_v1 = vmul.f32 %v124_v27, %v1992_v42  ;;  %v421_v6 = vld [vmem:[#allocation9 + $0x380] sm:$0xff] }
  0x5b   :  { %1505 = vmatprep.subr.bf16.mxu0 %v1504_v24  ;;  %v121_v63 = vadd.f32 %v119_v53, %v115_v40  ;;  %v1510_v2 = vpack.c.bf16 %v324_v49, %v323_v48  ;;  %v99_v3 = vadd.f32 %v97_v47, %v93_v56  ;;  %v131_v5 = vmul.f32 %v130_v33, %v1994_v43  ;;  %v422_v7 = vld [vmem:[#allocation9 + $0x388] sm:$0xff]  ;;  %v373_v18 = vld [vmem:[#allocation9 + $0x200] sm:$0xff]  ;;  %v392_v24 = vld [vmem:[#allocation9 + $0x298] sm:$0xff] }
  0x5c   :  { %1535 = vmatpush3.bf16.msra.mxu1 %v1534_v23  ;;  %v100_v4 = vadd.f32 %v98_v50, %v94_v57  ;;  %v1542_v8 = vpack.c.bf16 %v356_v55, %v355_v54  ;;  %v122_v9 = vadd.f32 %v120_v62, %v116_v52  ;;  %v132_v11 = vmul.f32 %v130_v33, %v1996_v44  ;;  %v374_v19 = vld [vmem:[#allocation9 + $0x208] sm:$0xff]  ;;  %v391_v23 = vld [vmem:[#allocation9 + $0x290] sm:$0xff]  ;;  %v405_v33 = vld [vmem:[#allocation9 + $0x300] sm:$0xff] }
  0x5d   :  { %1537 = vmatprep.subr.bf16.mxu1 %v1536_v29  ;;  %v127_v10 = vadd.f32 %v125_v0, %v121_v63  ;;  %v105_v12 = vadd.f32 %v103_v51, %v99_v3  ;;  %v1544_v14 = vpack.c.bf16 %v390_v61, %v389_v60  ;;  %v136_v15 = vstv %s1977_s10  ;;  %v375_v38 = vld [vmem:[#allocation9 + $0x210] sm:$0xff]  ;;  %v424_v46 = vld [vmem:[#allocation9 + $0x398] sm:$0xff]  ;;  %v393_v50 = vld [vmem:[#allocation9 + $0x2a0] sm:$0xff]  ;;  %s2206_s10 = sld [smem:[#allocation7 + $0x6]] }
  0x5e   :  { %1507 = vmatpush3.bf16.msra.mxu0 %v1506_v28  ;;  %v106_v13 = vadd.f32 %v104_v58, %v100_v4  ;;  %v128_v16 = vadd.f32 %v126_v1, %v122_v9  ;;  %v1576_v20 = vpack.c.bf16 %v422_v7, %v421_v6  ;;  %v142_v27 = vstv %s2005_s11  ;;  %v423_v45 = vld [vmem:[#allocation9 + $0x390] sm:$0xff]  ;;  %v394_v51 = vld [vmem:[#allocation9 + $0x2a8] sm:$0xff]  ;;  %v408_v56 = vld [vmem:[#allocation9 + $0x318] sm:$0xff]  ;;  %s2211_s11 = sld [smem:[#allocation7 + $0x7]] }
  0x5f   :  { %1509 = vmatprep.subr.bf16.mxu0 %v1508_v34  ;;  %v133_v17 = vadd.f32 %v131_v5, %v127_v10  ;;  %v109_v21 = vadd.f32 %v108_v59, %v105_v12  ;;  %v406_v34 = vld [vmem:[#allocation9 + $0x308] sm:$0xff]  ;;  %v1548_v40 = vpack.c.bf16 %v392_v24, %v391_v23  ;;  %v146_v47 = vstv %s2012_s12  ;;  %v407_v55 = vld [vmem:[#allocation9 + $0x310] sm:$0xff]  ;;  %v377_v60 = vld [vmem:[#allocation9 + $0x220] sm:$0xff] }
  0x60   :  { %1539 = vmatpush3.bf16.msra.mxu1 %v1538_v30  ;;  %v110_v22 = vadd.f32 %v108_v59, %v106_v13  ;;  %v134_v25 = vadd.f32 %v132_v11, %v128_v16  ;;  %v1546_v30 = vpack.c.bf16 %v374_v19, %v373_v18  ;;  %v152_v48 = vstv %s2014_s13  ;;  %v378_v61 = vld [vmem:[#allocation9 + $0x228] sm:$0xff]  ;;  %v425_v62 = vld [vmem:[#allocation9 + $0x3a0] sm:$0xff]  ;;  %v395_v6 = vld [vmem:[#allocation9 + $0x2b0] sm:$0xff] }
  0x61   :  { %1541 = vmatprep.subr.bf16.mxu1 %v1540_v41  ;;  %v137_v26 = vadd.f32 %v136_v15, %v133_v17  ;;  %v111_v28 = vmax.f32 %v109_v21, 0.0  ;;  %v376_v41 = vld [vmem:[#allocation9 + $0x218] sm:$0xff]  ;;  %v144_v52 = vmul.f32 %v142_v27, %v1974_v32  ;;  %v1578_v54 = vpack.c.bf16 %v406_v34, %v405_v33  ;;  %v2044_v3 = vld [vmem:[#allocation9 + $0x320] sm:$0xff]  ;;  %v2046_v4 = vld [vmem:[#allocation9 + $0x328] sm:$0xff] }
  0x62   :  { %1511 = vmatpush3.bf16.msra.mxu0 %v1510_v2  ;;  %v112_v29 = vmax.f32 %v110_v22, 0.0  ;;  %v138_v39 = vadd.f32 %v136_v15, %v134_v25  ;;  %v158_v57 = vstv %s2018_s14  ;;  %v1550_v58 = vpack.c.bf16 %v376_v41, %v375_v38  ;;  %v426_v2 = vld [vmem:[#allocation9 + $0x3a8] sm:$0xff]  ;;  %v396_v7 = vld [vmem:[#allocation9 + $0x2b8] sm:$0xff]  ;;  %v2057_v18 = vld [vmem:[#allocation9 + $0x330] sm:$0xff] }
  0x63   :  { %1545 = vmatprep.subr.bf16.mxu0 %v1544_v14  ;;  %v139_v49 = vmax.f32 %v137_v26, 0.0  ;;  %v1580_v59 = vpack.c.bf16 %v424_v46, %v423_v45  ;;  %v148_v63 = vmul.f32 %v146_v47, %v1983_v36  ;;  %v154_v0 = vmul.f32 %v152_v48, %v1992_v42  ;;  %v380_v13 = vld [vmem:[#allocation9 + $0x238] sm:$0xff]  ;;  %v427_v14 = vld [vmem:[#allocation9 + $0x3b0] sm:$0xff]  ;;  %v397_v24 = vld [vmem:[#allocation9 + $0x2c0] sm:$0xff] }
  0x64   :  { %1543 = vmatpush3.bf16.msra.mxu1 %v1542_v8  ;;  %636 = vmatprep.mubr.f32.mxu0 %v112_v29  ;;  %v140_v53 = vmax.f32 %v138_v39, 0.0  ;;  %v1552_v1 = vpack.c.bf16 %v394_v51, %v393_v50  ;;  %v170_v5 = vstv %s2021_s0  ;;  %v2051_v8 = vld [vmem:[#allocation9 + $0x230] sm:$0xff]  ;;  %v160_v10 = vmul.f32 %v158_v57, %v1996_v44  ;;  %v428_v15 = vld [vmem:[#allocation9 + $0x3b8] sm:$0xff]  ;;  %v398_v25 = vld [vmem:[#allocation9 + $0x2c8] sm:$0xff] }
  0x65   :  { %1577 = vmatprep.subr.bf16.mxu1 %v1576_v20  ;;  %637 = vmatmul.mubr.f32.vlgmr.msra.gmra.mrb[0].mxu0 %v111_v28  ;;  %v150_v9 = vadd.f32 %v148_v63, %v144_v52  ;;  %v1582_v11 = vpack.c.bf16 %v408_v56, %v407_v55  ;;  %v1554_v12 = vpack.c.bf16 %v378_v61, %v377_v60  ;;  %v174_v16 = vstv %s2026_s16  ;;  %v2059_v19 = vld [vmem:[#allocation9 + $0x338] sm:$0xff]  ;;  %v2073_v33 = vld [vmem:[#allocation9 + $0x240] sm:$0xff]  ;;  %v430_v45 = vld [vmem:[#allocation9 + $0x3c8] sm:$0xff] }
  0x66   :  { %1547 = vmatpush3.bf16.msra.mxu0 %v1546_v30  ;;  %706 = vmatprep.mubr.f32.mxu1 %v140_v53  ;;  %v1584_v17 = vpack.c.bf16 %v426_v2, %v425_v62  ;;  %v172_v21 = vmul.f32 %v170_v5, %v1974_v32  ;;  %v1586_v22 = vpack.c.bf16 %v2046_v4, %v2044_v3  ;;  %v164_v26 = vstv %s2024_s15  ;;  %v429_v41 = vld [vmem:[#allocation9 + $0x3c0] sm:$0xff]  ;;  %v2087_v53 = vld [vmem:[#allocation9 + $0x348] sm:$0xff]  ;;  %v399_v56 = vld [vmem:[#allocation9 + $0x2d0] sm:$0xff] }
  0x67   :  { %1549 = vmatprep.subr.bf16.mxu0 %v1548_v40  ;;  %707 = vmatmul.mubr.f32.vlgmr.msra.gmra.mrb[0].mxu1 %v139_v49  ;;  %v156_v20 = vadd.f32 %v154_v0, %v150_v9  ;;  %v1556_v23 = vpack.c.bf16 %v396_v7, %v395_v6  ;;  %v180_v28 = vstv %s2030_s17  ;;  %v1558_v29 = vpack.c.bf16 %v380_v13, %v2051_v8  ;;  %v382_v40 = vld [vmem:[#allocation9 + $0x248] sm:$0xff]  ;;  %v2085_v52 = vld [vmem:[#allocation9 + $0x340] sm:$0xff]  ;;  %v383_v2 = vld [vmem:[#allocation9 + $0x250] sm:$0xff] }
  0x68   :  { %1579 = vmatpush3.bf16.msra.mxu1 %v1578_v54  ;;  %v1588_v30 = vpack.c.bf16 %v428_v15, %v427_v14  ;;  %v176_v38 = vmul.f32 %v174_v16, %v1983_v36  ;;  %v1590_v39 = vpack.c.bf16 %v2059_v19, %v2057_v18  ;;  %v143_v46 = vmul.f32 %v142_v27, %v1972_v31  ;;  %v400_v27 = vld [vmem:[#allocation9 + $0x2d8] sm:$0xff]  ;;  %v431_v8 = vld [vmem:[#allocation9 + $0x3d0] sm:$0xff]  ;;  %v401_v13 = vld [vmem:[#allocation9 + $0x2e0] sm:$0xff] }
  0x69   :  { %1581 = vmatprep.subr.bf16.mxu1 %v1580_v59  ;;  %v162_v34 = vadd.f32 %v160_v10, %v156_v20  ;;  %v147_v49 = vmul.f32 %v146_v47, %v1981_v35  ;;  %v186_v50 = vstv %s2036_s18  ;;  %v1560_v51 = vpack.c.bf16 %v398_v25, %v397_v24  ;;  %v384_v3 = vld [vmem:[#allocation9 + $0x258] sm:$0xff]  ;;  %v402_v14 = vld [vmem:[#allocation9 + $0x2e8] sm:$0xff] }
  0x6a   :  { %1551 = vmatpush3.bf16.msra.mxu0 %v1550_v58  ;;  %v178_v55 = vadd.f32 %v176_v38, %v172_v21  ;;  %v171_v58 = vmul.f32 %v170_v5, %v1972_v31  ;;  %v175_v47 = vmul.f32 %v174_v16, %v1981_v35  ;;  %v182_v59 = vmul.f32 %v180_v28, %v1992_v42  ;;  %v432_v9 = vld [vmem:[#allocation9 + $0x3d8] sm:$0xff] }
  0x6b   :  { %1553 = vmatprep.subr.bf16.mxu0 %v1552_v1  ;;  %v166_v54 = vadd.f32 %v164_v26, %v162_v34  ;;  %v198_v60 = vstv %s2049_s19  ;;  %v1562_v61 = vpack.c.bf16 %v382_v40, %v2073_v33  ;;  %v1592_v62 = vpack.c.bf16 %v430_v45, %v429_v41  ;;  %v416_v24 = vld [vmem:[#allocation9 + $0x358] sm:$0xff]  ;;  %v386_v33 = vld [vmem:[#allocation9 + $0x268] sm:$0xff] }
  0x6c   :  { %1583 = vmatpush3.bf16.msra.mxu1 %v1582_v11  ;;  %v188_v0 = vmul.f32 %v186_v50, %v1996_v44  ;;  %v1594_v1 = vpack.c.bf16 %v2087_v53, %v2085_v52  ;;  %v149_v4 = vadd.f32 %v147_v49, %v143_v46  ;;  %v153_v5 = vmul.f32 %v152_v48, %v1985_v37  ;;  %v434_v40 = vld [vmem:[#allocation9 + $0x3e8] sm:$0xff]  ;;  %v403_v52 = vld [vmem:[#allocation9 + $0x2f0] sm:$0xff]  ;;  %v404_v53 = vld [vmem:[#allocation9 + $0x2f8] sm:$0xff] }
  0x6d   :  { %1585 = vmatprep.subr.bf16.mxu1 %v1584_v17  ;;  %v168_v63 = vmax.f32 %v166_v54, 0.0  ;;  %v184_v6 = vadd.f32 %v182_v59, %v178_v55  ;;  %v1564_v7 = vpack.c.bf16 %v400_v27, %v399_v56  ;;  %v192_v10 = vstv %s2062_s20  ;;  %v417_v59 = vld [vmem:[#allocation9 + $0x360] sm:$0xff] }
  0x6e   :  { %1555 = vmatpush3.bf16.msra.mxu0 %v1554_v12  ;;  %v199_v11 = vmul.f32 %v198_v60, %v1972_v31  ;;  %v202_v12 = vstv %s2064_s21  ;;  %v177_v48 = vadd.f32 %v175_v47, %v171_v58  ;;  %v181_v15 = vmul.f32 %v180_v28, %v1985_v37 }
  0x6f   :  { %1557 = vmatprep.subr.bf16.mxu0 %v1556_v23  ;;  %776 = vmatprep.mubr.f32.mxu0 %v168_v63  ;;  %v190_v16 = vadd.f32 %v188_v0, %v184_v6  ;;  %v208_v17 = vstv %s2070_s2  ;;  %v1566_v18 = vpack.c.bf16 %v384_v3, %v383_v2  ;;  %v159_v19 = vmul.f32 %v158_v57, %v1994_v43  ;;  %v415_v23 = vld [vmem:[#allocation9 + $0x350] sm:$0xff]  ;;  %v388_v2 = vld [vmem:[#allocation9 + $0x278] sm:$0xff] }
  0x70   :  { %1587 = vmatpush3.bf16.msra.mxu1 %v1586_v22  ;;  %v200_v20 = vmul.f32 %v198_v60, %v1974_v32  ;;  %v203_v21 = vmul.f32 %v202_v12, %v1981_v35  ;;  %v1596_v22 = vpack.c.bf16 %v432_v9, %v431_v8  ;;  %v155_v25 = vadd.f32 %v153_v5, %v149_v4  ;;  %v418_v60 = vld [vmem:[#allocation9 + $0x368] sm:$0xff]  ;;  %v435_v3 = vld [vmem:[#allocation9 + $0x3f0] sm:$0xff]  ;;  %v436_v4 = vld [vmem:[#allocation9 + $0x3f8] sm:$0xff] }
  0x71   :  { %1589 = vmatprep.subr.bf16.mxu1 %v1588_v30  ;;  %v194_v28 = vadd.f32 %v192_v10, %v190_v16  ;;  %v1568_v57 = vpack.c.bf16 %v402_v14, %v401_v13  ;;  %v385_v30 = vld [vmem:[#allocation9 + $0x260] sm:$0xff]  ;;  %v209_v38 = vmul.f32 %v208_v17, %v1985_v37  ;;  %v183_v41 = vadd.f32 %v181_v15, %v177_v48  ;;  %v454_v9 = vld [vmem:[#allocation9 + $0x488] sm:$0xff]  ;;  %v419_v15 = vld [vmem:[#allocation9 + $0x370] sm:$0xff] }
  0x72   :  { %1559 = vmatpush3.bf16.msra.mxu0 %v1558_v29  ;;  %v204_v29 = vmul.f32 %v202_v12, %v1983_v36  ;;  %v205_v34 = vadd.f32 %v203_v21, %v199_v11  ;;  %v187_v45 = vmul.f32 %v186_v50, %v1994_v43  ;;  %v210_v54 = vmul.f32 %v208_v17, %v1992_v42  ;;  %v453_v8 = vld [vmem:[#allocation9 + $0x480] sm:$0xff]  ;;  %v420_v16 = vld [vmem:[#allocation9 + $0x378] sm:$0xff] }
  0x73   :  { %1561 = vmatprep.subr.bf16.mxu0 %v1560_v51  ;;  %v196_v46 = vmax.f32 %v194_v28, 0.0  ;;  %v1598_v51 = vpack.c.bf16 %v416_v24, %v415_v23  ;;  %v214_v56 = vstv %s2099_s22  ;;  %v1570_v27 = vpack.c.bf16 %v386_v33, %v385_v30  ;;  %v437_v21 = vld [vmem:[#allocation9 + $0x400] sm:$0xff] }
  0x74   :  { %1591 = vmatpush3.bf16.msra.mxu1 %v1590_v39  ;;  %v433_v39 = vld [vmem:[#allocation9 + $0x3e0] sm:$0xff]  ;;  %v206_v49 = vadd.f32 %v204_v29, %v200_v20  ;;  %v211_v55 = vadd.f32 %v209_v38, %v205_v34  ;;  %v161_v58 = vadd.f32 %v159_v19, %v155_v25  ;;  %v215_v47 = vmul.f32 %v214_v56, %v1994_v43  ;;  %v486_v29 = vld [vmem:[#allocation9 + $0x588] sm:$0xff]  ;;  %v455_v34 = vld [vmem:[#allocation9 + $0x490] sm:$0xff] }
  0x75   :  { %1593 = vmatprep.subr.bf16.mxu1 %v1592_v62  ;;  %846 = vmatprep.mubr.f32.mxu1 %v196_v46  ;;  %v1600_v50 = vpack.c.bf16 %v434_v40, %v433_v39  ;;  %v216_v63 = vmul.f32 %v214_v56, %v1996_v44  ;;  %v226_v0 = vstv %s2109_s23  ;;  %v189_v5 = vadd.f32 %v187_v45, %v183_v41  ;;  %v485_v28 = vld [vmem:[#allocation9 + $0x580] sm:$0xff]  ;;  %v456_v38 = vld [vmem:[#allocation9 + $0x498] sm:$0xff] }
  0x76   :  { %1563 = vmatpush3.bf16.msra.mxu0 %v1562_v61  ;;  %v387_v61 = vld [vmem:[#allocation9 + $0x270] sm:$0xff]  ;;  %v212_v62 = vadd.f32 %v210_v54, %v206_v49  ;;  %v2138_v6 = vadd.f32 %v215_v47, %v211_v55  ;;  %v220_v12 = vstv %s2118_s24  ;;  %v228_v13 = vmul.f32 %v226_v0, %v1974_v32  ;;  %v488_v47 = vld [vmem:[#allocation9 + $0x598] sm:$0xff] }
  0x77   :  { %1565 = vmatprep.subr.bf16.mxu0 %v1564_v7  ;;  %v227_v7 = vmul.f32 %v226_v0, %v1972_v31  ;;  %v230_v14 = vstv %s2120_s25  ;;  %v1602_v48 = vpack.c.bf16 %v418_v60, %v417_v59  ;;  %v165_v17 = vadd.f32 %v164_v26, %v161_v58  ;;  %v439_v54 = vld [vmem:[#allocation9 + $0x410] sm:$0xff] }
  0x78   :  { %1595 = vmatpush3.bf16.msra.mxu1 %v1594_v1  ;;  %v1572_v1 = vpack.c.bf16 %v404_v53, %v403_v52  ;;  %v218_v11 = vadd.f32 %v216_v63, %v212_v62  ;;  %v1574_v19 = vpack.c.bf16 %v388_v2, %v387_v61  ;;  %v1604_v20 = vpack.c.bf16 %v436_v4, %v435_v3  ;;  %v469_v52 = vld [vmem:[#allocation9 + $0x500] sm:$0xff]  ;;  %v470_v53 = vld [vmem:[#allocation9 + $0x508] sm:$0xff]  ;;  %v487_v58 = vld [vmem:[#allocation9 + $0x590] sm:$0xff] }
  0x79   :  { %1597 = vmatprep.subr.bf16.mxu1 %v1596_v22  ;;  %v438_v22 = vld [vmem:[#allocation9 + $0x408] sm:$0xff]  ;;  %v232_v23 = vmul.f32 %v230_v14, %v1983_v36  ;;  %v236_v24 = vstv %s2126_s26  ;;  %v1608_v25 = vpack.c.bf16 %v454_v9, %v453_v8  ;;  %v1606_v30 = vpack.c.bf16 %v420_v16, %v419_v15  ;;  %v457_v62 = vld [vmem:[#allocation9 + $0x4a0] sm:$0xff]  ;;  %v471_v4 = vld [vmem:[#allocation9 + $0x510] sm:$0xff] }
  0x7a   :  { %1567 = vmatpush3.bf16.msra.mxu0 %v1566_v18  ;;  %v231_v18 = vmul.f32 %v230_v14, %v1981_v35  ;;  %v222_v26 = vadd.f32 %v220_v12, %v218_v11  ;;  %v193_v33 = vadd.f32 %v192_v10, %v189_v5  ;;  %v237_v40 = vmul.f32 %v236_v24, %v1985_v37  ;;  %v458_v63 = vld [vmem:[#allocation9 + $0x4a8] sm:$0xff]  ;;  %v472_v5 = vld [vmem:[#allocation9 + $0x518] sm:$0xff]  ;;  %v489_v16 = vld [vmem:[#allocation9 + $0x5a0] sm:$0xff] }
  0x7b   :  { %1569 = vmatprep.subr.bf16.mxu0 %v1568_v57  ;;  %v234_v39 = vadd.f32 %v232_v23, %v228_v13  ;;  %v167_v41 = vmax.f32 %v165_v17, 0.0  ;;  %v1610_v45 = vpack.c.bf16 %v438_v22, %v437_v21  ;;  %v238_v46 = vmul.f32 %v236_v24, %v1992_v42  ;;  %v441_v13 = vld [vmem:[#allocation9 + $0x420] sm:$0xff]  ;;  %v442_v14 = vld [vmem:[#allocation9 + $0x428] sm:$0xff]  ;;  %v459_v21 = vld [vmem:[#allocation9 + $0x4b0] sm:$0xff] }
  0x7c   :  { %1599 = vmatpush3.bf16.msra.mxu1 %v1598_v51  ;;  %v233_v57 = vadd.f32 %v231_v18, %v227_v7  ;;  %v242_v49 = vstv %s2134_s27  ;;  %v1640_v51 = vpack.c.bf16 %v486_v29, %v485_v28  ;;  %v1612_v56 = vpack.c.bf16 %v456_v38, %v455_v34  ;;  %v490_v17 = vld [vmem:[#allocation9 + $0x5a8] sm:$0xff]  ;;  %v460_v22 = vld [vmem:[#allocation9 + $0x4b8] sm:$0xff]  ;;  %v473_v28 = vld [vmem:[#allocation9 + $0x520] sm:$0xff] }
  0x7d   :  { %1601 = vmatprep.subr.bf16.mxu1 %v1600_v50  ;;  %v243_v55 = vmul.f32 %v242_v49, %v1994_v43  ;;  %v224_v50 = vmax.f32 %v222_v26, 0.0  ;;  %v240_v59 = vadd.f32 %v238_v46, %v234_v39  ;;  %v244_v60 = vmul.f32 %v242_v49, %v1996_v44  ;;  %v443_v34 = vld [vmem:[#allocation9 + $0x430] sm:$0xff]  ;;  %v444_v38 = vld [vmem:[#allocation9 + $0x438] sm:$0xff] }
  0x7e   :  { %1571 = vmatpush3.bf16.msra.mxu0 %v1570_v27  ;;  %v239_v10 = vadd.f32 %v237_v40, %v233_v57  ;;  %v440_v27 = vld [vmem:[#allocation9 + $0x418] sm:$0xff]  ;;  %v195_v61 = vmax.f32 %v193_v33, 0.0  ;;  %v254_v2 = vstv %s2146_s28  ;;  %v1642_v3 = vpack.c.bf16 %v470_v53, %v469_v52  ;;  %v474_v33 = vld [vmem:[#allocation9 + $0x528] sm:$0xff]  ;;  %v491_v46 = vld [vmem:[#allocation9 + $0x5b0] sm:$0xff] }
  0x7f   :  { %1573 = vmatprep.subr.bf16.mxu0 %v1572_v1  ;;  %v248_v1 = vstv %s2144_s3  ;;  %v246_v7 = vadd.f32 %v244_v60, %v240_v59  ;;  %v258_v8 = vstv %s2151_s29  ;;  %v1614_v9 = vpack.c.bf16 %v440_v27, %v439_v54  ;;  %v492_v49 = vld [vmem:[#allocation9 + $0x5b8] sm:$0xff]  ;;  %v461_v52 = vld [vmem:[#allocation9 + $0x4c0] sm:$0xff]  ;;  %v462_v53 = vld [vmem:[#allocation9 + $0x4c8] sm:$0xff] }
  0x80   :  { %1603 = vmatpush3.bf16.msra.mxu1 %v1602_v48  ;;  %v2170_v0 = vadd.f32 %v243_v55, %v239_v10  ;;  %v1644_v11 = vpack.c.bf16 %v488_v47, %v487_v58  ;;  %v255_v48 = vmul.f32 %v254_v2, %v1972_v31  ;;  %v1616_v15 = vpack.c.bf16 %v458_v63, %v457_v62  ;;  %v475_v60 = vld [vmem:[#allocation9 + $0x530] sm:$0xff]  ;;  %v445_v62 = vld [vmem:[#allocation9 + $0x440] sm:$0xff] }
  0x81   :  { %1605 = vmatprep.subr.bf16.mxu1 %v1604_v20  ;;  %v250_v18 = vadd.f32 %v248_v1, %v246_v7  ;;  %v1646_v20 = vpack.c.bf16 %v472_v5, %v471_v4  ;;  %v256_v23 = vmul.f32 %v254_v2, %v1974_v32  ;;  %v259_v24 = vmul.f32 %v258_v8, %v1981_v35  ;;  %v446_v5 = vld [vmem:[#allocation9 + $0x448] sm:$0xff]  ;;  %v493_v7 = vld [vmem:[#allocation9 + $0x5c0] sm:$0xff] }
  0x82   :  { %1575 = vmatpush3.bf16.msra.mxu0 %v1574_v19  ;;  %v264_v19 = vstv %s2157_s30  ;;  %v260_v26 = vmul.f32 %v258_v8, %v1983_v36  ;;  %v270_v57 = vstv %s2164_s1  ;;  %v1650_v27 = vpack.c.bf16 %v474_v33, %v473_v28  ;;  %v494_v8 = vld [vmem:[#allocation9 + $0x5c8] sm:$0xff] }
  0x83   :  { %1609 = vmatprep.subr.bf16.mxu0 %v1608_v25  ;;  %v1618_v25 = vpack.c.bf16 %v442_v14, %v441_v13  ;;  %v252_v29 = vmax.f32 %v250_v18, 0.0  ;;  %v261_v39 = vadd.f32 %v259_v24, %v255_v48  ;;  %v265_v40 = vmul.f32 %v264_v19, %v1985_v37  ;;  %v464_v13 = vld [vmem:[#allocation9 + $0x4d8] sm:$0xff]  ;;  %v495_v24 = vld [vmem:[#allocation9 + $0x5d0] sm:$0xff] }
  0x84   :  { %1607 = vmatpush3.bf16.msra.mxu1 %v1606_v30  ;;  %v1648_v30 = vpack.c.bf16 %v490_v17, %v489_v16  ;;  %v266_v54 = vmul.f32 %v264_v19, %v1992_v42  ;;  %v271_v55 = vmul.f32 %v270_v57, %v1994_v43  ;;  %v1622_v58 = vpack.c.bf16 %v444_v38, %v443_v34 }
  0x85   :  { %777 = vmatmul.mubr.f32.vlgmr.msra.gmra.mrb[2].mxu0 %v167_v41  ;;  %1641 = vmatprep.subr.bf16.mxu1 %v1640_v51  ;;  %v282_v41 = vstv %s2167_s6  ;;  %v262_v51 = vadd.f32 %v260_v26, %v256_v23  ;;  %v267_v10 = vadd.f32 %v265_v40, %v261_v39  ;;  %v272_v47 = vmul.f32 %v270_v57, %v1996_v44  ;;  %v448_v23 = vld [vmem:[#allocation9 + $0x458] sm:$0xff]  ;;  %v466_v26 = vld [vmem:[#allocation9 + $0x4e8] sm:$0xff]  ;;  %v479_v39 = vld [vmem:[#allocation9 + $0x550] sm:$0xff] }
  0x86   :  { %1611 = vmatpush3.bf16.msra.mxu0 %v1610_v45  ;;  %916 = vmatprep.mubr.f32.mxu0 %v224_v50  ;;  %v1620_v45 = vpack.c.bf16 %v460_v22, %v459_v21  ;;  %v283_v50 = vmul.f32 %v282_v41, %v1972_v31  ;;  %v1652_v59 = vpack.c.bf16 %v492_v49, %v491_v46  ;;  %v463_v31 = vld [vmem:[#allocation9 + $0x4d0] sm:$0xff]  ;;  %v480_v40 = vld [vmem:[#allocation9 + $0x558] sm:$0xff]  ;;  %v450_v46 = vld [vmem:[#allocation9 + $0x468] sm:$0xff] }
  0x87   :  { %1613 = vmatprep.subr.bf16.mxu0 %v1612_v56  ;;  %847 = vmatmul.mubr.f32.vlgmr.msra.gmra.mrb[2].mxu1 %v195_v61  ;;  %v286_v56 = vstv %s2174_s7  ;;  %v476_v61 = vld [vmem:[#allocation9 + $0x538] sm:$0xff]  ;;  %v268_v63 = vadd.f32 %v266_v54, %v262_v51  ;;  %v2196_v2 = vadd.f32 %v271_v55, %v267_v10  ;;  %v1624_v4 = vpack.c.bf16 %v462_v53, %v461_v52  ;;  %v447_v21 = vld [vmem:[#allocation9 + $0x450] sm:$0xff]  ;;  %v497_v49 = vld [vmem:[#allocation9 + $0x5e0] sm:$0xff] }
  0x88   :  { %1643 = vmatpush3.bf16.msra.mxu1 %v1642_v3  ;;  %986 = vmatprep.mubr.f32.mxu1 %v252_v29  ;;  %v292_v3 = vstv %s2178_s8  ;;  %v288_v48 = vmul.f32 %v286_v56, %v1983_v36  ;;  %v1626_v18 = vpack.c.bf16 %v446_v5, %v445_v62  ;;  %v1656_v19 = vpack.c.bf16 %v494_v8, %v493_v7  ;;  %v465_v29 = vld [vmem:[#allocation9 + $0x4e0] sm:$0xff]  ;;  %v498_v51 = vld [vmem:[#allocation9 + $0x5e8] sm:$0xff]  ;;  %v467_v53 = vld [vmem:[#allocation9 + $0x4f0] sm:$0xff] }
  0x89   :  { %1645 = vmatprep.subr.bf16.mxu1 %v1644_v11  ;;  %v287_v11 = vmul.f32 %v286_v56, %v1981_v35  ;;  %v2201_v14 = vadd.f32 %v272_v47, %v268_v63  ;;  %v293_v17 = vmul.f32 %v292_v3, %v1985_v37  ;;  %v1628_v22 = vpack.c.bf16 %v464_v13, %v463_v31  ;;  %v481_v56 = vld [vmem:[#allocation9 + $0x560] sm:$0xff]  ;;  %v518_v62 = vld [vmem:[#allocation9 + $0x688] sm:$0xff]  ;;  %v483_v8 = vld [vmem:[#allocation9 + $0x570] sm:$0xff] }
  0x8a   :  { %1615 = vmatpush3.bf16.msra.mxu0 %v1614_v9  ;;  %v284_v9 = vmul.f32 %v282_v41, %v1974_v32  ;;  %v478_v32 = vld [vmem:[#allocation9 + $0x548] sm:$0xff]  ;;  %v294_v36 = vmul.f32 %v292_v3, %v1992_v42  ;;  %v298_v37 = vstv %s2192_s9  ;;  %v1630_v34 = vpack.c.bf16 %v448_v23, %v447_v21  ;;  %v449_v41 = vld [vmem:[#allocation9 + $0x460] sm:$0xff] }
  0x8b   :  { %1617 = vmatprep.subr.bf16.mxu0 %v1616_v15  ;;  %v1654_v15 = vpack.c.bf16 %v476_v61, %v475_v60  ;;  %v289_v16 = vadd.f32 %v287_v11, %v283_v50  ;;  %v299_v33 = vmul.f32 %v298_v37, %v1994_v43  ;;  %v300_v42 = vmul.f32 %v298_v37, %v1996_v44  ;;  %v468_v43 = vld [vmem:[#allocation9 + $0x4f8] sm:$0xff]  ;;  %v517_v61 = vld [vmem:[#allocation9 + $0x680] sm:$0xff]  ;;  %v534_v23 = vld [vmem:[#allocation9 + $0x708] sm:$0xff] }
  0x8c   :  { %1647 = vmatpush3.bf16.msra.mxu1 %v1646_v20  ;;  %v477_v20 = vld [vmem:[#allocation9 + $0x540] sm:$0xff]  ;;  %v290_v35 = vadd.f32 %v288_v48, %v284_v9  ;;  %v1662_v10 = vpack.c.bf16 %v480_v40, %v479_v39  ;;  %v1634_v55 = vpack.c.bf16 %v450_v46, %v449_v41  ;;  %v1664_v44 = vpack.c.bf16 %v498_v51, %v497_v49  ;;  %v452_v50 = vld [vmem:[#allocation9 + $0x478] sm:$0xff]  ;;  %v502_v48 = vld [vmem:[#allocation9 + $0x608] sm:$0xff] }
  0x8d   :  { %1649 = vmatprep.subr.bf16.mxu1 %v1648_v30  ;;  %v295_v28 = vadd.f32 %v293_v17, %v289_v16  ;;  %v1658_v57 = vpack.c.bf16 %v478_v32, %v477_v20  ;;  %v1636_v47 = vpack.c.bf16 %v468_v43, %v467_v53  ;;  %v500_v60 = vld [vmem:[#allocation9 + $0x5f8] sm:$0xff]  ;;  %v276_v63 = vstv %s2206_s10  ;;  %v501_v11 = vld [vmem:[#allocation9 + $0x600] sm:$0xff]  ;;  %v550_v16 = vld [vmem:[#allocation9 + $0x788] sm:$0xff] }
  0x8e   :  { %1619 = vmatpush3.bf16.msra.mxu0 %v1618_v25  ;;  %v496_v25 = vld [vmem:[#allocation9 + $0x5d8] sm:$0xff]  ;;  %v296_v30 = vadd.f32 %v294_v36, %v290_v35  ;;  %v304_v31 = vstv %s2211_s11  ;;  %v1672_v13 = vpack.c.bf16 %v518_v62, %v517_v61  ;;  %v278_v17 = vadd.f32 %v276_v63, %v2201_v14  ;;  %v551_v36 = vld [vmem:[#allocation9 + $0x790] sm:$0xff]  ;;  %v505_v39 = vld [vmem:[#allocation9 + $0x620] sm:$0xff] }
  0x8f   :  { %1621 = vmatprep.subr.bf16.mxu0 %v1620_v45  ;;  %v1660_v38 = vpack.c.bf16 %v496_v25, %v495_v24  ;;  %v1632_v45 = vpack.c.bf16 %v466_v26, %v465_v29  ;;  %v2213_v52 = vadd.f32 %v299_v33, %v295_v28  ;;  %v484_v9 = vld [vmem:[#allocation9 + $0x578] sm:$0xff]  ;;  %v1674_v21 = vpack.c.bf16 %v502_v48, %v501_v11  ;;  %v503_v24 = vld [vmem:[#allocation9 + $0x610] sm:$0xff]  ;;  %v521_v29 = vld [vmem:[#allocation9 + $0x6a0] sm:$0xff] }
  0x90   :  { %1651 = vmatpush3.bf16.msra.mxu1 %v1650_v27  ;;  %v302_v54 = vadd.f32 %v300_v42, %v296_v30  ;;  %v482_v27 = vld [vmem:[#allocation9 + $0x568] sm:$0xff]  ;;  %v504_v14 = vld [vmem:[#allocation9 + $0x618] sm:$0xff]  ;;  %v553_v42 = vld [vmem:[#allocation9 + $0x7a0] sm:$0xff] }
  0x91   :  { %1653 = vmatprep.subr.bf16.mxu1 %v1652_v59  ;;  %v499_v59 = vld [vmem:[#allocation9 + $0x5f0] sm:$0xff]  ;;  %v1666_v3 = vpack.c.bf16 %v482_v27, %v481_v56  ;;  %v552_v28 = vld [vmem:[#allocation9 + $0x798] sm:$0xff]  ;;  %v522_v26 = vld [vmem:[#allocation9 + $0x6a8] sm:$0xff]  ;;  %v1678_v30 = vpack.c.bf16 %v504_v14, %v503_v24 }
  0x92   :  { %1623 = vmatpush3.bf16.msra.mxu0 %v1622_v58  ;;  %v451_v58 = vld [vmem:[#allocation9 + $0x470] sm:$0xff]  ;;  %v1668_v7 = vpack.c.bf16 %v500_v60, %v499_v59  ;;  %v306_v32 = vadd.f32 %v304_v31, %v302_v54  ;;  %v1708_v33 = vpack.c.bf16 %v552_v28, %v551_v36  ;;  %v1680_v40 = vpack.c.bf16 %v522_v26, %v521_v29  ;;  %v506_v41 = vld [vmem:[#allocation9 + $0x628] sm:$0xff]  ;;  %v524_v49 = vld [vmem:[#allocation9 + $0x6b8] sm:$0xff] }
  0x93   :  { %1625 = vmatprep.subr.bf16.mxu0 %v1624_v4  ;;  %v221_v4 = vadd.f32 %v220_v12, %v2138_v6  ;;  %v1638_v5 = vpack.c.bf16 %v452_v50, %v451_v58  ;;  %v249_v6 = vadd.f32 %v248_v1, %v2170_v0  ;;  %v519_v12 = vld [vmem:[#allocation9 + $0x690] sm:$0xff]  ;;  %v280_v0 = vmax.f32 %v278_v17, 0.0  ;;  %v537_v54 = vld [vmem:[#allocation9 + $0x720] sm:$0xff]  ;;  %v508_v56 = vld [vmem:[#allocation9 + $0x638] sm:$0xff] }
  0x94   :  { %1655 = vmatpush3.bf16.msra.mxu1 %v1654_v15  ;;  %v549_v15 = vld [vmem:[#allocation9 + $0x780] sm:$0xff]  ;;  %v523_v46 = vld [vmem:[#allocation9 + $0x6b0] sm:$0xff]  ;;  %v1682_v53 = vpack.c.bf16 %v506_v41, %v505_v39  ;;  %v556_v58 = vld [vmem:[#allocation9 + $0x7b8] sm:$0xff] }
  0x95   :  { %1657 = vmatprep.subr.bf16.mxu1 %v1656_v19  ;;  %v1670_v19 = vpack.c.bf16 %v484_v9, %v483_v8  ;;  %v223_v20 = vmax.f32 %v221_v4, 0.0  ;;  %v1704_v35 = vpack.c.bf16 %v550_v16, %v549_v15  ;;  %v251_v1 = vmax.f32 %v249_v6, 0.0  ;;  %v555_v27 = vld [vmem:[#allocation9 + $0x7b0] sm:$0xff]  ;;  %v526_v50 = vld [vmem:[#allocation9 + $0x6c8] sm:$0xff]  ;;  %v509_v4 = vld [vmem:[#allocation9 + $0x640] sm:$0xff] }
  0x96   :  { %1627 = vmatpush3.bf16.msra.mxu0 %v1626_v18  ;;  %v520_v18 = vld [vmem:[#allocation9 + $0x698] sm:$0xff]  ;;  %v1716_v61 = vpack.c.bf16 %v556_v58, %v555_v27  ;;  %v539_v62 = vld [vmem:[#allocation9 + $0x730] sm:$0xff]  ;;  %v557_v8 = vld [vmem:[#allocation9 + $0x7c0] sm:$0xff] }
  0x97   :  { %1629 = vmatprep.subr.bf16.mxu0 %v1628_v22  ;;  %v533_v22 = vld [vmem:[#allocation9 + $0x700] sm:$0xff]  ;;  %v1676_v25 = vpack.c.bf16 %v520_v18, %v519_v12  ;;  %v558_v9 = vld [vmem:[#allocation9 + $0x7c8] sm:$0xff]  ;;  %v527_v11 = vld [vmem:[#allocation9 + $0x6d0] sm:$0xff] }
  0x98   :  { %1659 = vmatpush3.bf16.msra.mxu1 %v1658_v57  ;;  %v1706_v37 = vpack.c.bf16 %v534_v23, %v533_v22  ;;  %v308_v57 = vmax.f32 %v306_v32, 0.0  ;;  %v1720_v16 = vpack.c.bf16 %v558_v9, %v557_v8  ;;  %v541_v17 = vld [vmem:[#allocation9 + $0x740] sm:$0xff]  ;;  %v542_v6 = vld [vmem:[#allocation9 + $0x748] sm:$0xff]  ;;  %v511_v12 = vld [vmem:[#allocation9 + $0x650] sm:$0xff] }
  0x99   :  { %1661 = vmatprep.subr.bf16.mxu1 %v1660_v38  ;;  %v536_v38 = vld [vmem:[#allocation9 + $0x718] sm:$0xff]  ;;  %v1722_v22 = vpack.c.bf16 %v542_v6, %v541_v17  ;;  %v513_v36 = vld [vmem:[#allocation9 + $0x660] sm:$0xff]  ;;  %v562_v29 = vld [vmem:[#allocation9 + $0x7e8] sm:$0xff] }
  0x9a   :  { %1631 = vmatpush3.bf16.msra.mxu0 %v1630_v34  ;;  %v535_v34 = vld [vmem:[#allocation9 + $0x710] sm:$0xff]  ;;  %v560_v32 = vld [vmem:[#allocation9 + $0x7d8] sm:$0xff] }
  0x9b   :  { %1633 = vmatprep.subr.bf16.mxu0 %v1632_v45  ;;  %v554_v45 = vld [vmem:[#allocation9 + $0x7a8] sm:$0xff]  ;;  %v1710_v51 = vpack.c.bf16 %v536_v38, %v535_v34  ;;  %v544_v14 = vld [vmem:[#allocation9 + $0x758] sm:$0xff]  ;;  %v531_v26 = vld [vmem:[#allocation9 + $0x6f0] sm:$0xff] }
  0x9c   :  { %1663 = vmatpush3.bf16.msra.mxu1 %v1662_v10  ;;  %v1712_v43 = vpack.c.bf16 %v554_v45, %v553_v42  ;;  %v538_v10 = vld [vmem:[#allocation9 + $0x728] sm:$0xff]  ;;  %v545_v34 = vld [vmem:[#allocation9 + $0x760] sm:$0xff]  ;;  %v515_v39 = vld [vmem:[#allocation9 + $0x670] sm:$0xff] }
  0x9d   :  { %1665 = vmatprep.subr.bf16.mxu1 %v1664_v44  ;;  %v1684_v44 = vpack.c.bf16 %v524_v49, %v523_v46  ;;  %v1714_v59 = vpack.c.bf16 %v538_v10, %v537_v54  ;;  %v546_v38 = vld [vmem:[#allocation9 + $0x768] sm:$0xff]  ;;  %v516_v41 = vld [vmem:[#allocation9 + $0x678] sm:$0xff]  ;;  %v563_v42 = vld [vmem:[#allocation9 + $0x7f0] sm:$0xff]  ;;  %v277_v49 = vadd.f32 %v276_v63, %v2196_v2  ;;  %v305_v10 = vadd.f32 %v304_v31, %v2213_v52 }
  0x9e   :  { %1635 = vmatpush3.bf16.msra.mxu0 %v1634_v55  ;;  %v507_v55 = vld [vmem:[#allocation9 + $0x630] sm:$0xff]  ;;  %v564_v45 = vld [vmem:[#allocation9 + $0x7f8] sm:$0xff]  ;;  %v1730_v46 = vpack.c.bf16 %v546_v38, %v545_v34  ;;  %v1199_v63 = vld [vmem:[%s2253_s4] ss:$0 sm:$0xff]  ;;  %s1857_s4 = smov [#allocation11]  }
  0x9f   :  { %1637 = vmatprep.subr.bf16.mxu0 %v1636_v47  ;;  %v525_v47 = vld [vmem:[#allocation9 + $0x6c0] sm:$0xff]  ;;  %v1686_v60 = vpack.c.bf16 %v508_v56, %v507_v55  ;;  %v548_v54 = vld [vmem:[#allocation9 + $0x778] sm:$0xff]  ;;  %v307_v56 = vmax.f32 %v305_v10, 0.0  ;;  %s1149_s14 = sshll.u32 %s1857_s4, 4  ;;  %s1150_s14 = int_to_ptr.vmem [resolvable:$true] %s1149_s14 }
  0xa0   :  { %1667 = vmatpush3.bf16.msra.mxu1 %v1666_v3  ;;  %v540_v3 = vld [vmem:[#allocation9 + $0x738] sm:$0xff]  ;;  %s1817_s0 = scalar_lea.vmem %s1150_s14, 128  ;;  %p1822_p13 = scmp.lt.s32.totalorder %s1150_s14, %s1150_s14 }
  0xa1   :  { %1669 = vmatprep.subr.bf16.mxu1 %v1668_v7  ;;  %v510_v7 = vld [vmem:[#allocation9 + $0x648] sm:$0xff]  ;;  %v1718_v48 = vpack.c.bf16 %v540_v3, %v539_v62  ;;  %p1818_p12 = scmp.ne.s32.totalorder %s1150_s14, %s1817_s0  ;;  %p1823_p0 = scmp.lt.s32.totalorder %s1817_s0, %s1817_s0 }
  0xa2   :  { %1639 = vmatpush3.bf16.msra.mxu0 %v1638_v5  ;;  %v1688_v5 = vpack.c.bf16 %v526_v50, %v525_v47  ;;  %v1690_v15 = vpack.c.bf16 %v510_v7, %v509_v4 }
  0xa3   :  { %1673 = vmatprep.subr.bf16.mxu0 %v1672_v13  ;;  %v528_v13 = vld [vmem:[#allocation9 + $0x6d8] sm:$0xff]  ;;  %p1824_p1 = por %p1823_p0, %p1822_p13 }
  0xa4   :  { %1671 = vmatpush3.bf16.msra.mxu1 %v1670_v19  ;;  %v1692_v18 = vpack.c.bf16 %v528_v13, %v527_v11  ;;  %v512_v19 = vld [vmem:[#allocation9 + $0x658] sm:$0xff] }
  0xa5   :  { %917 = vmatmul.mubr.f32.vlgmr.msra.gmra.mrb[4].mxu0 %v223_v20  ;;  %1705 = vmatprep.subr.bf16.mxu1 %v1704_v35  ;;  %v559_v20 = vld [vmem:[#allocation9 + $0x7d0] sm:$0xff]  ;;  %v530_v35 = vld [vmem:[#allocation9 + $0x6e8] sm:$0xff]  ;;  %v1694_v23 = vpack.c.bf16 %v512_v19, %v511_v12  ;;  %p1825_p2 = pnand %p1824_p1, %p1818_p12 }
  0xa6   :  { %1675 = vmatpush3.bf16.msra.mxu0 %v1674_v21  ;;  %1056 = vmatprep.mubr.f32.mxu0 %v280_v0  ;;  %v529_v21 = vld [vmem:[#allocation9 + $0x6e0] sm:$0xff]  ;;  %v1724_v24 = vpack.c.bf16 %v560_v32, %v559_v20  ;;  %v514_v0 = vld [vmem:[#allocation9 + $0x668] sm:$0xff] }
  0xa7   :  { %1677 = vmatprep.subr.bf16.mxu0 %v1676_v25  ;;  %987 = vmatmul.mubr.f32.vlgmr.msra.gmra.mrb[4].mxu1 %v251_v1  ;;  %v543_v25 = vld [vmem:[#allocation9 + $0x750] sm:$0xff]  ;;  %v1696_v28 = vpack.c.bf16 %v530_v35, %v529_v21  ;;  %v561_v1 = vld [vmem:[#allocation9 + $0x7e0] sm:$0xff] }
  0xa8   :  { %1707 = vmatpush3.bf16.msra.mxu1 %v1706_v37  ;;  %1126 = vmatprep.mubr.f32.mxu1 %v308_v57  ;;  %v532_v37 = vld [vmem:[#allocation9 + $0x6f8] sm:$0xff]  ;;  %v1726_v57 = vpack.c.bf16 %v544_v14, %v543_v25 }
  0xa9   :  { %1709 = vmatprep.subr.bf16.mxu1 %v1708_v33  ;;  %v1728_v33 = vpack.c.bf16 %v562_v29, %v561_v1 }
  0xaa   :  { %1679 = vmatpush3.bf16.msra.mxu0 %v1678_v30  ;;  %v1698_v30 = vpack.c.bf16 %v514_v0, %v513_v36 }
  0xab   :  { %1681 = vmatprep.subr.bf16.mxu0 %v1680_v40  ;;  %v1700_v40 = vpack.c.bf16 %v532_v37, %v531_v26 }
  0xac   :  { %1711 = vmatpush3.bf16.msra.mxu1 %v1710_v51  ;;  %v1702_v51 = vpack.c.bf16 %v516_v41, %v515_v39 }
  0xad   :  { %1713 = vmatprep.subr.bf16.mxu1 %v1712_v43  ;;  %v547_v43 = vld [vmem:[#allocation9 + $0x770] sm:$0xff] }
  0xae   :  { %1683 = vmatpush3.bf16.msra.mxu0 %v1682_v53  ;;  %v1732_v53 = vpack.c.bf16 %v564_v45, %v563_v42  ;;  %v1734_v55 = vpack.c.bf16 %v548_v54, %v547_v43 }
  0xaf   :  { %1685 = vmatprep.subr.bf16.mxu0 %v1684_v44  ;;  %v279_v44 = vmax.f32 %v277_v49, 0.0 }
  0xb0   :  { %1715 = vmatpush3.bf16.msra.mxu1 %v1714_v59 }
  0xb1   :  { %1717 = vmatprep.subr.bf16.mxu1 %v1716_v61 }
  0xb2   :  { %1687 = vmatpush3.bf16.msra.mxu0 %v1686_v60 }
  0xb3   :  { %1689 = vmatprep.subr.bf16.mxu0 %v1688_v5 }
  0xb4   :  { %1719 = vmatpush3.bf16.msra.mxu1 %v1718_v48 }
  0xb5   :  { %1721 = vmatprep.subr.bf16.mxu1 %v1720_v16 }
  0xb6   :  { %1691 = vmatpush3.bf16.msra.mxu0 %v1690_v15 }
  0xb7   :  { %1693 = vmatprep.subr.bf16.mxu0 %v1692_v18 }
  0xb8   :  { %1723 = vmatpush3.bf16.msra.mxu1 %v1722_v22 }
  0xb9   :  { %1725 = vmatprep.subr.bf16.mxu1 %v1724_v24 }
  0xba   :  { %1695 = vmatpush3.bf16.msra.mxu0 %v1694_v23 }
  0xbb   :  { %1697 = vmatprep.subr.bf16.mxu0 %v1696_v28 }
  0xbc   :  { %1727 = vmatpush3.bf16.msra.mxu1 %v1726_v57 }
  0xbd   :  { %1729 = vmatprep.subr.bf16.mxu1 %v1728_v33 }
  0xbe   :  { %1699 = vmatpush3.bf16.msra.mxu0 %v1698_v30 }
  0xbf   :  { %1701 = vmatprep.subr.bf16.mxu0 %v1700_v40 }
  0xc0   :  { %1731 = vmatpush3.bf16.msra.mxu1 %v1730_v46 }
  0xc1   :  { %1733 = vmatprep.subr.bf16.mxu1 %v1732_v53 }
  0xc2   :  { %1703 = vmatpush3.bf16.msra.mxu0 %v1702_v51 }
  0xc4   :  { %1735 = vmatpush3.bf16.msra.mxu1 %v1734_v55 }
  0xc5   :  { %1057 = vmatmul.mubr.f32.vlgmr.msra.gmra.mrb[6].mxu0 %v279_v44 }
  0xc7   :  { %1127 = vmatmul.mubr.f32.vlgmr.msra.gmra.mrb[6].mxu1 %v307_v56 }
 0x138   :  { %v1232_v2 = vpop.f32.mrb[0].mxu0 }
 0x139   :  { %v1233_v27 = vpop.f32.mrb[1].mxu0 }
 0x13a   :  { %v1234_v58 = vadd.f32 %v1233_v27, %v1232_v2  ;;  %v1267_v47 = vpop.f32.mrb[0].mxu1 }
 0x13b   :  { %v1268_v59 = vpop.f32.mrb[1].mxu1 }
 0x13c   :  { %v639_v50 = vadd.f32 %v1234_v58, %v1199_v63  ;;  %v1269_v52 = vadd.f32 %v1268_v59, %v1267_v47 }
 0x13e   :  { %v709_v31 = vadd.f32 %v1269_v52, %v639_v50 }
 0x158   :  { %v1302_v60 = vpop.f32.mrb[2].mxu0 }
 0x159   :  { %v1303_v61 = vpop.f32.mrb[3].mxu0 }
 0x15a   :  { %v1304_v62 = vadd.f32 %v1303_v61, %v1302_v60  ;;  %v1337_v3 = vpop.f32.mrb[2].mxu1 }
 0x15b   :  { %v1338_v5 = vpop.f32.mrb[3].mxu1 }
 0x15c   :  { %v779_v4 = vadd.f32 %v1304_v62, %v709_v31  ;;  %v1339_v7 = vadd.f32 %v1338_v5, %v1337_v3 }
 0x15e   :  { %v849_v8 = vadd.f32 %v1339_v7, %v779_v4 }
 0x178   :  { %v1372_v9 = vpop.f32.mrb[4].mxu0 }
 0x179   :  { %v1373_v11 = vpop.f32.mrb[5].mxu0 }
 0x17a   :  { %v1374_v13 = vadd.f32 %v1373_v11, %v1372_v9  ;;  %v1407_v48 = vpop.f32.mrb[4].mxu1 }
 0x17b   :  { %v1408_v16 = vpop.f32.mrb[5].mxu1 }
 0x17c   :  { %v919_v15 = vadd.f32 %v1374_v13, %v849_v8  ;;  %v1409_v17 = vadd.f32 %v1408_v16, %v1407_v48 }
 0x17e   :  { %v989_v6 = vadd.f32 %v1409_v17, %v919_v15 }
 0x198   :  { %v1442_v12 = vpop.f32.mrb[6].mxu0 }
 0x199   :  { %v1443_v18 = vpop.f32.mrb[7].mxu0 }
 0x19a   :  { %v1444_v19 = vadd.f32 %v1443_v18, %v1442_v12  ;;  %v1477_v20 = vpop.f32.mrb[6].mxu1 }
 0x19b   :  { %v1478_v21 = vpop.f32.mrb[7].mxu1 }
 0x19c   :  { %v1059_v32 = vadd.f32 %v1444_v19, %v989_v6  ;;  %v1479_v35 = vadd.f32 %v1478_v21, %v1477_v20 }
 0x19e   :  { %v1129_v22 = vadd.f32 %v1479_v35, %v1059_v32 }
 0x1a0   :  { %1132 = vmax.xlane.f32.xlu0 %v1129_v22 }
 0x22d   :  { %v1133_v23 = vpop.xlane.xlu0 %1132 }
 0x22e   :  { %v1134_v24 = vsub.f32 %v1129_v22, %v1133_v23 }
 0x230   :  { %v1135_v25 = vmul.f32 1.442695, %v1134_v24 }
 0x232   :  { %1745 = vpow2.f32 %v1135_v25 }
 0x23c   :  { %v1746_v14 = vpop.eup %1745 }
 0x23d   :  { %1137 = vadd.xlane.f32.xlu0 %v1746_v14 }
 0x2ca   :  { %v1138_v36 = vpop.xlane.xlu0 %1137 }
 0x2cb   :  { %1747 = vlog2.f32 %v1138_v36 }
 0x2d5   :  { %v1748_v28 = vpop.eup %1747 }
 0x2d6   :  { %v1140_v0 = vmul.f32 0.6931472, %v1748_v28 }
 0x2d8   :  { %v1141_v1 = vsub.f32 %v1134_v24, %v1140_v0 }
 0x2da   :  { %1142 = vst [vmem:[#allocation11] sm:$0xff] %v1141_v1 }
 0x2db   :  { %1828 = shalt.err (!%p1825_p2)
}
 0x2dc   :  { %s1829_s17 = scalar_lea.hbm %s2254_s5, 128 }
 0x2dd   :  { %p1830_p3 = scmp.ne.s32.totalorder %s2254_s5, %s1829_s17  ;;  %p1833_p4 = scmp.lt.u32.totalorder %s1829_s17, %s2254_s5 }
 0x2df   :  { %p1835_p5 = pnand %p1833_p4, %p1830_p3 }
 0x2e1   :  { %1838 = shalt.err (!%p1835_p5)
}
 0x2e2   :  { %1152 = dma.vmem_to_hbm [thread:$0]  %s1150_s14, 128, %s2254_s5, [#allocation4]  }
 0x2e3   :  { %1847 = dma.done.wait [#allocation4], 128  }
 0x2e4   :  { %1848 = vsyncadd [#allocation4], 4294967168 }
 0x2e5   :  { %1156 = vsyncpa [#allocation3], 1 }
 0x2e6   :  { %1157 = vsyncpa [#allocation10], 1 }
 0x2e7   :  { %1158 = vsyncpa [#allocation4], 1 }
 0x2e8   :  { %1159 = vsyncpa [#allocation5], 1 }
 0x2e9   :  { %1160 = vsyncpa [#allocation8], 1 }

</bundles_post_ra>
